<compile_context>
chip_gen: v7x
topology: tpu7x:2x2x1
jax: 0.10.0
libtpu: 0.0.40
codegen_flags: <defaults>
</compile_context>

<pallas_src>
import jax
import jax.numpy as jnp
from jax import lax
from jax.experimental import pallas as pl
from jax.experimental.pallas import tpu as pltpu

EMB_DIM = 50
DICT_SIZE = 53 + 3 + 16    # 72
DICT_PAD = 128
LANE = 128


def _rup(n, m):
    return ((n + m - 1) // m) * m


# --------------------------------------------------------------------------- #
# Kernel
# --------------------------------------------------------------------------- #
def make_dqn_kernel(seq_len):
    """Build the kernel closed over the static sequence length."""

    def dqn_kernel(tok_ref, t1_ref, b1_ref,
                   w2_ref, b2_ref, w3_ref, b3_ref,
                   w4_ref, b4_ref, w5_ref, b5_ref, w6_ref, b6_ref,
                   o_ref):
        tile_b = tok_ref.shape[0]
        h1p = t1_ref.shape[2]
        tok = tok_ref[...]                                       # [TILE_B, S] int32
        lane_iota = lax.broadcasted_iota(jnp.int32, (tile_b, DICT_PAD), 1)

        # ---- Layer 1 with the embedding gather folded in ----------------- #
        # x1_pre[b, h] = sum_s T[s, tok[b, s], h] + b1[h]
        # The per-token lookup is a one-hot [TILE_B,128] @ [128,256] MXU pass.
        acc = jnp.zeros((tile_b, h1p), jnp.float32)
        for s in range(seq_len):
            ids = tok[:, s:s + 1]                                # [TILE_B, 1]
            onehot = (lane_iota == ids).astype(jnp.bfloat16)     # [TILE_B, 128]
            acc = acc + jnp.dot(onehot, t1_ref[s],
                                preferred_element_type=jnp.float32)
        x1 = jnp.maximum(acc + b1_ref[...], 0.0).astype(jnp.bfloat16)

        def lin(v_bf16, w_ref, b_ref):
            # bf16 x bf16 MXU pass with f32 accumulation; bias stays f32.
            return jnp.dot(v_bf16, w_ref[...],
                           preferred_element_type=jnp.float32) + b_ref[...]

        # ReLU / residual adds in f32 (v5e-safe); skips held as bf16 between uses.
        x2 = jnp.maximum(lin(x1, w2_ref, b2_ref), 0.0).astype(jnp.bfloat16)
        x3 = jnp.maximum(lin(x2, w3_ref, b3_ref), 0.0).astype(jnp.bfloat16)
        x4 = jnp.maximum(lin(x3, w4_ref, b4_ref) + x2.astype(jnp.float32),
                         0.0).astype(jnp.bfloat16)               # relu(h4(x3)+x2)
        x5 = jnp.maximum(lin(x4, w5_ref, b5_ref) + x1.astype(jnp.float32),
                         0.0).astype(jnp.bfloat16)               # relu(h5(x4)+x1)
        o_ref[...] = lin(x5, w6_ref, b6_ref)                     # output (padded)

    return dqn_kernel


# --------------------------------------------------------------------------- #
# Parameters
# --------------------------------------------------------------------------- #
def init_params(key, input_size, hidden_size=60, output_size=52):
    """Deterministic init mimicking PyTorch defaults (uniform +-1/sqrt(fan_in))."""
    keys = jax.random.split(key, 14)
    params = {"emb": jax.random.normal(keys[0], (DICT_SIZE, EMB_DIM), jnp.float32)}
    dims = [
        (1, input_size * EMB_DIM, hidden_size * 4),
        (2, hidden_size * 4, hidden_size * 2),
        (3, hidden_size * 2, hidden_size),
        (4, hidden_size, hidden_size * 2),
        (5, hidden_size * 2, hidden_size * 4),
        (6, hidden_size * 4, output_size),
    ]
    ki = 1
    for idx, fan_in, fan_out in dims:
        bound = 1.0 / (fan_in ** 0.5)
        # stored as [in, out] (pre-transposed relative to PyTorch's [out, in])
        params[f"w{idx}"] = jax.random.uniform(
            keys[ki], (fan_in, fan_out), jnp.float32, -bound, bound)
        params[f"b{idx}"] = jax.random.uniform(
            keys[ki + 1], (1, fan_out), jnp.float32, -bound, bound)
        ki += 2
    return params


def prepare_padded_params(params, input_size, hidden_size=60, output_size=52):
    """Fold embedding into W1, zero-pad feature dims to 128, cast weights to bf16."""
    h1, h2, h3 = hidden_size * 4, hidden_size * 2, hidden_size
    rnd32 = lambda a: a.astype(jnp.bfloat16).astype(jnp.float32)

    padded = {}

    # Folded layer-1 table: T[s, d, h] = sum_e emb[d, e] * W1[s*EMB_DIM + e, h]
    # (matches PyTorch .view(B, -1) token-major / emb-minor ordering).
    h1p = _rup(h1, LANE)
    w1 = params["w1"].reshape(input_size, EMB_DIM, h1)
    t = jnp.einsum("de,seh->sdh", rnd32(params["emb"]), rnd32(w1),
                   precision=lax.Precision.HIGHEST)              # [S, 72, 240] f32
    t_pad = jnp.zeros((input_size, DICT_PAD, h1p), jnp.float32)
    t_pad = t_pad.at[:, :DICT_SIZE, :h1].set(t)
    padded["t1"] = t_pad.astype(jnp.bfloat16)                    # [S, 128, 256] bf16
    padded["b1"] = jnp.zeros((1, h1p), jnp.float32).at[:, :h1].set(params["b1"])

    dims = [(2, h1, h2), (3, h2, h3), (4, h3, h2), (5, h2, h1), (6, h1, output_size)]
    for idx, fan_in, fan_out in dims:
        in_p, out_p = _rup(fan_in, LANE), _rup(fan_out, LANE)
        w_pad = jnp.zeros((in_p, out_p), jnp.float32)
        w_pad = w_pad.at[:fan_in, :fan_out].set(params[f"w{idx}"])
        b_pad = jnp.zeros((1, out_p), jnp.float32).at[:, :fan_out].set(params[f"b{idx}"])
        padded[f"w{idx}"] = w_pad.astype(jnp.bfloat16)
        padded[f"b{idx}"] = b_pad                                # biases stay f32
    return padded


# --------------------------------------------------------------------------- #
# Wrapper
# --------------------------------------------------------------------------- #
def _const_spec(arr):
    # Constant block index -> weight/table stays VMEM-resident across grid steps.
    if arr.ndim == 3:
        return pl.BlockSpec(arr.shape, lambda i: (0, 0, 0))
    return pl.BlockSpec(arr.shape, lambda i: (0, 0))


def dqn_forward(padded, x_tokens, *, output_size=52, tile_b=None):
    B, S = x_tokens.shape
    # Clamp ids like jnp.take does (one-hot would silently return zeros OOB).
    tokens = jnp.clip(x_tokens.astype(jnp.int32), 0, DICT_SIZE - 1)

    if tile_b is None:
        # 128-row tiles for real batches (full MXU rows); B >= 256 gives >= 2
        # parallel grid steps so both v7x TensorCores get work.  Tiny batches
        # (<= 8) are pure launch/DMA latency, so keep padding minimal there.
        tile_b = 128 if B >= 128 else max(8, _rup(B, 8))
    b_pad = _rup(max(B, tile_b), tile_b)
    if b_pad != B:
        tokens = jnp.pad(tokens, ((0, b_pad - B), (0, 0)))

    out_pad = padded["b6"].shape[1]

    weight_args = [padded["t1"], padded["b1"]]
    for n in range(2, 7):
        weight_args += [padded[f"w{n}"], padded[f"b{n}"]]
    weight_specs = [_const_spec(a) for a in weight_args]

    out = pl.pallas_call(
        make_dqn_kernel(S),
        out_shape=jax.ShapeDtypeStruct((b_pad, out_pad), jnp.float32),
        grid=(b_pad // tile_b,),
        in_specs=[pl.BlockSpec((tile_b, S), lambda i: (i, 0))] + weight_specs,
        out_specs=pl.BlockSpec((tile_b, out_pad), lambda i: (i, 0)),
        compiler_params=pltpu.CompilerParams(
            dimension_semantics=("parallel",)),
    )(tokens, *weight_args)
    return out[:B, :output_size]


# --------------------------------------------------------------------------- #
# Reference (plain JAX, f32 math with bf16-rounded weights to match the kernel)
# --------------------------------------------------------------------------- #
def dqn_reference(params, x_tokens):
    rnd = lambda a: a.astype(jnp.bfloat16).astype(jnp.float32)
    B = x_tokens.shape[0]
    x = jnp.take(rnd(params["emb"]), x_tokens.astype(jnp.int32), axis=0).reshape(B, -1)

    def lin(v, n):
        return jnp.dot(v, rnd(params[f"w{n}"]),
                       precision=jax.lax.Precision.HIGHEST) + params[f"b{n}"]

    relu = lambda v: jnp.maximum(v, 0.0)
    x1 = relu(lin(x, 1))
    x2 = relu(lin(x1, 2))
    x3 = relu(lin(x2, 3))
    x4 = relu(lin(x3, 4) + x2)
    x5 = relu(lin(x4, 5) + x1)
    return lin(x5, 6)


if __name__ == "__main__":
    key = jax.random.PRNGKey(0)
    input_size = 8                    # sequence length (tokens)
    hidden_size, output_size = 60, 52

    pkey, xkey_small, xkey_big = jax.random.split(key, 3)
    params = init_params(pkey, input_size, hidden_size, output_size)
    padded = prepare_padded_params(params, input_size, hidden_size, output_size)

    def check(x_tokens):
        out = jax.block_until_ready(
            dqn_forward(padded, x_tokens, output_size=output_size))
        ref = dqn_reference(params, x_tokens)
        assert out.shape == (x_tokens.shape[0], output_size), out.shape
        # Tolerance absorbs bf16 weight/activation rounding on the MXU path.
        assert jnp.allclose(out, ref, atol=5e-2, rtol=5e-2), (
            "mismatch vs reference: max abs diff "
            f"{float(jnp.max(jnp.abs(out - ref)))}")

    # Small latency-regime shape: batch=2, seq=8.
    check(jax.random.randint(xkey_small, (2, input_size), 0, DICT_SIZE, jnp.int32))
    # Batched shape exercising 128-row tiles and a 2-step parallel grid.
    check(jax.random.randint(xkey_big, (256, input_size), 0, DICT_SIZE, jnp.int32))

    print("KERNEL_OK")
</pallas_src>

<mosaic_0001>
module attributes {stable_mosaic.version = 11 : i64} {
  func.func @dqn_kernel(%arg0: i32, %arg1: memref<8x8xi32, #tpu.memory_space<vmem>>, %arg2: memref<8x128x256xbf16, #tpu.memory_space<vmem>>, %arg3: memref<1x256xf32, #tpu.memory_space<vmem>>, %arg4: memref<256x128xbf16, #tpu.memory_space<vmem>>, %arg5: memref<1x128xf32, #tpu.memory_space<vmem>>, %arg6: memref<128x128xbf16, #tpu.memory_space<vmem>>, %arg7: memref<1x128xf32, #tpu.memory_space<vmem>>, %arg8: memref<128x128xbf16, #tpu.memory_space<vmem>>, %arg9: memref<1x128xf32, #tpu.memory_space<vmem>>, %arg10: memref<128x256xbf16, #tpu.memory_space<vmem>>, %arg11: memref<1x256xf32, #tpu.memory_space<vmem>>, %arg12: memref<256x128xbf16, #tpu.memory_space<vmem>>, %arg13: memref<1x128xf32, #tpu.memory_space<vmem>>, %arg14: memref<8x128xf32, #tpu.memory_space<vmem>>) attributes {dimension_semantics = [#tpu.dimension_semantics<parallel>], iteration_bounds = array<i64: 1>, scalar_prefetch = 0 : i64, scratch_operands = 0 : i64, tpu.core_type = #tpu.core_type<tc>, window_params = [{transform_indices = @transform_0, window_bounds = array<i64: 8, 8>}, {pipeline_mode = #tpu.pipeline_mode<synchronous>, transform_indices = @transform_1, window_bounds = array<i64: 8, 128, 256>}, {pipeline_mode = #tpu.pipeline_mode<synchronous>, transform_indices = @transform_2, window_bounds = array<i64: 1, 256>}, {pipeline_mode = #tpu.pipeline_mode<synchronous>, transform_indices = @transform_3, window_bounds = array<i64: 256, 128>}, {pipeline_mode = #tpu.pipeline_mode<synchronous>, transform_indices = @transform_4, window_bounds = array<i64: 1, 128>}, {pipeline_mode = #tpu.pipeline_mode<synchronous>, transform_indices = @transform_5, window_bounds = array<i64: 128, 128>}, {pipeline_mode = #tpu.pipeline_mode<synchronous>, transform_indices = @transform_6, window_bounds = array<i64: 1, 128>}, {pipeline_mode = #tpu.pipeline_mode<synchronous>, transform_indices = @transform_7, window_bounds = array<i64: 128, 128>}, {pipeline_mode = #tpu.pipeline_mode<synchronous>, transform_indices = @transform_8, window_bounds = array<i64: 1, 128>}, {pipeline_mode = #tpu.pipeline_mode<synchronous>, transform_indices = @transform_9, window_bounds = array<i64: 128, 256>}, {pipeline_mode = #tpu.pipeline_mode<synchronous>, transform_indices = @transform_10, window_bounds = array<i64: 1, 256>}, {pipeline_mode = #tpu.pipeline_mode<synchronous>, transform_indices = @transform_11, window_bounds = array<i64: 256, 128>}, {pipeline_mode = #tpu.pipeline_mode<synchronous>, transform_indices = @transform_12, window_bounds = array<i64: 1, 128>}, {transform_indices = @transform_13, window_bounds = array<i64: 8, 128>}]} {
    %c0 = arith.constant 0 : index
    %c0_0 = arith.constant 0 : index
    %0 = vector.load %arg1[%c0, %c0_0] : memref<8x8xi32, #tpu.memory_space<vmem>>, vector<8x8xi32>
    %1 = tpu.iota {dimensions = array<i32: 1>} : vector<8x128xi32>
    %cst = arith.constant 0.000000e+00 : f32
    %2 = vector.broadcast %cst : f32 to vector<8x256xf32>
    %3 = vector.extract_strided_slice %0 {offsets = [0, 0], sizes = [8, 1], strides = [1, 1]} : vector<8x8xi32> to vector<8x1xi32>
    %4 = vector.broadcast %3 : vector<8x1xi32> to vector<8x128xi32>
    %5 = arith.cmpi eq, %1, %4 : vector<8x128xi32>
    %6 = arith.extui %5 : vector<8x128xi1> to vector<8x128xi32>
    %7 = arith.sitofp %6 : vector<8x128xi32> to vector<8x128xf32>
    %8 = arith.truncf %7 : vector<8x128xf32> to vector<8x128xbf16>
    %c0_1 = arith.constant 0 : index
    %c0_2 = arith.constant 0 : index
    %c0_3 = arith.constant 0 : index
    %9 = vector.load %arg2[%c0_1, %c0_2, %c0_3] : memref<8x128x256xbf16, #tpu.memory_space<vmem>>, vector<1x128x256xbf16>
    %10 = vector.shape_cast %9 : vector<1x128x256xbf16> to vector<128x256xbf16>
    %cst_4 = arith.constant dense<0.000000e+00> : vector<8x256xf32>
    %11 = tpu.matmul %8, %10, %cst_4 {dimension_numbers = #tpu.dot_dimension_numbers<[1], [0], [0], [1], [0, 0, 1, 1], [], []>} : vector<8x128xbf16>, vector<128x256xbf16>, vector<8x256xf32> -> vector<8x256xf32>
    %12 = arith.addf %2, %11 : vector<8x256xf32>
    %13 = vector.extract_strided_slice %0 {offsets = [0, 1], sizes = [8, 1], strides = [1, 1]} : vector<8x8xi32> to vector<8x1xi32>
    %14 = vector.broadcast %13 : vector<8x1xi32> to vector<8x128xi32>
    %15 = arith.cmpi eq, %1, %14 : vector<8x128xi32>
    %16 = arith.extui %15 : vector<8x128xi1> to vector<8x128xi32>
    %17 = arith.sitofp %16 : vector<8x128xi32> to vector<8x128xf32>
    %18 = arith.truncf %17 : vector<8x128xf32> to vector<8x128xbf16>
    %c1 = arith.constant 1 : index
    %c0_5 = arith.constant 0 : index
    %c0_6 = arith.constant 0 : index
    %19 = vector.load %arg2[%c1, %c0_5, %c0_6] : memref<8x128x256xbf16, #tpu.memory_space<vmem>>, vector<1x128x256xbf16>
    %20 = vector.shape_cast %19 : vector<1x128x256xbf16> to vector<128x256xbf16>
    %cst_7 = arith.constant dense<0.000000e+00> : vector<8x256xf32>
    %21 = tpu.matmul %18, %20, %cst_7 {dimension_numbers = #tpu.dot_dimension_numbers<[1], [0], [0], [1], [0, 0, 1, 1], [], []>} : vector<8x128xbf16>, vector<128x256xbf16>, vector<8x256xf32> -> vector<8x256xf32>
    %22 = arith.addf %12, %21 : vector<8x256xf32>
    %23 = vector.extract_strided_slice %0 {offsets = [0, 2], sizes = [8, 1], strides = [1, 1]} : vector<8x8xi32> to vector<8x1xi32>
    %24 = vector.broadcast %23 : vector<8x1xi32> to vector<8x128xi32>
    %25 = arith.cmpi eq, %1, %24 : vector<8x128xi32>
    %26 = arith.extui %25 : vector<8x128xi1> to vector<8x128xi32>
    %27 = arith.sitofp %26 : vector<8x128xi32> to vector<8x128xf32>
    %28 = arith.truncf %27 : vector<8x128xf32> to vector<8x128xbf16>
    %c2 = arith.constant 2 : index
    %c0_8 = arith.constant 0 : index
    %c0_9 = arith.constant 0 : index
    %29 = vector.load %arg2[%c2, %c0_8, %c0_9] : memref<8x128x256xbf16, #tpu.memory_space<vmem>>, vector<1x128x256xbf16>
    %30 = vector.shape_cast %29 : vector<1x128x256xbf16> to vector<128x256xbf16>
    %cst_10 = arith.constant dense<0.000000e+00> : vector<8x256xf32>
    %31 = tpu.matmul %28, %30, %cst_10 {dimension_numbers = #tpu.dot_dimension_numbers<[1], [0], [0], [1], [0, 0, 1, 1], [], []>} : vector<8x128xbf16>, vector<128x256xbf16>, vector<8x256xf32> -> vector<8x256xf32>
    %32 = arith.addf %22, %31 : vector<8x256xf32>
    %33 = vector.extract_strided_slice %0 {offsets = [0, 3], sizes = [8, 1], strides = [1, 1]} : vector<8x8xi32> to vector<8x1xi32>
    %34 = vector.broadcast %33 : vector<8x1xi32> to vector<8x128xi32>
    %35 = arith.cmpi eq, %1, %34 : vector<8x128xi32>
    %36 = arith.extui %35 : vector<8x128xi1> to vector<8x128xi32>
    %37 = arith.sitofp %36 : vector<8x128xi32> to vector<8x128xf32>
    %38 = arith.truncf %37 : vector<8x128xf32> to vector<8x128xbf16>
    %c3 = arith.constant 3 : index
    %c0_11 = arith.constant 0 : index
    %c0_12 = arith.constant 0 : index
    %39 = vector.load %arg2[%c3, %c0_11, %c0_12] : memref<8x128x256xbf16, #tpu.memory_space<vmem>>, vector<1x128x256xbf16>
    %40 = vector.shape_cast %39 : vector<1x128x256xbf16> to vector<128x256xbf16>
    %cst_13 = arith.constant dense<0.000000e+00> : vector<8x256xf32>
    %41 = tpu.matmul %38, %40, %cst_13 {dimension_numbers = #tpu.dot_dimension_numbers<[1], [0], [0], [1], [0, 0, 1, 1], [], []>} : vector<8x128xbf16>, vector<128x256xbf16>, vector<8x256xf32> -> vector<8x256xf32>
    %42 = arith.addf %32, %41 : vector<8x256xf32>
    %43 = vector.extract_strided_slice %0 {offsets = [0, 4], sizes = [8, 1], strides = [1, 1]} : vector<8x8xi32> to vector<8x1xi32>
    %44 = vector.broadcast %43 : vector<8x1xi32> to vector<8x128xi32>
    %45 = arith.cmpi eq, %1, %44 : vector<8x128xi32>
    %46 = arith.extui %45 : vector<8x128xi1> to vector<8x128xi32>
    %47 = arith.sitofp %46 : vector<8x128xi32> to vector<8x128xf32>
    %48 = arith.truncf %47 : vector<8x128xf32> to vector<8x128xbf16>
    %c4 = arith.constant 4 : index
    %c0_14 = arith.constant 0 : index
    %c0_15 = arith.constant 0 : index
    %49 = vector.load %arg2[%c4, %c0_14, %c0_15] : memref<8x128x256xbf16, #tpu.memory_space<vmem>>, vector<1x128x256xbf16>
    %50 = vector.shape_cast %49 : vector<1x128x256xbf16> to vector<128x256xbf16>
    %cst_16 = arith.constant dense<0.000000e+00> : vector<8x256xf32>
    %51 = tpu.matmul %48, %50, %cst_16 {dimension_numbers = #tpu.dot_dimension_numbers<[1], [0], [0], [1], [0, 0, 1, 1], [], []>} : vector<8x128xbf16>, vector<128x256xbf16>, vector<8x256xf32> -> vector<8x256xf32>
    %52 = arith.addf %42, %51 : vector<8x256xf32>
    %53 = vector.extract_strided_slice %0 {offsets = [0, 5], sizes = [8, 1], strides = [1, 1]} : vector<8x8xi32> to vector<8x1xi32>
    %54 = vector.broadcast %53 : vector<8x1xi32> to vector<8x128xi32>
    %55 = arith.cmpi eq, %1, %54 : vector<8x128xi32>
    %56 = arith.extui %55 : vector<8x128xi1> to vector<8x128xi32>
    %57 = arith.sitofp %56 : vector<8x128xi32> to vector<8x128xf32>
    %58 = arith.truncf %57 : vector<8x128xf32> to vector<8x128xbf16>
    %c5 = arith.constant 5 : index
    %c0_17 = arith.constant 0 : index
    %c0_18 = arith.constant 0 : index
    %59 = vector.load %arg2[%c5, %c0_17, %c0_18] : memref<8x128x256xbf16, #tpu.memory_space<vmem>>, vector<1x128x256xbf16>
    %60 = vector.shape_cast %59 : vector<1x128x256xbf16> to vector<128x256xbf16>
    %cst_19 = arith.constant dense<0.000000e+00> : vector<8x256xf32>
    %61 = tpu.matmul %58, %60, %cst_19 {dimension_numbers = #tpu.dot_dimension_numbers<[1], [0], [0], [1], [0, 0, 1, 1], [], []>} : vector<8x128xbf16>, vector<128x256xbf16>, vector<8x256xf32> -> vector<8x256xf32>
    %62 = arith.addf %52, %61 : vector<8x256xf32>
    %63 = vector.extract_strided_slice %0 {offsets = [0, 6], sizes = [8, 1], strides = [1, 1]} : vector<8x8xi32> to vector<8x1xi32>
    %64 = vector.broadcast %63 : vector<8x1xi32> to vector<8x128xi32>
    %65 = arith.cmpi eq, %1, %64 : vector<8x128xi32>
    %66 = arith.extui %65 : vector<8x128xi1> to vector<8x128xi32>
    %67 = arith.sitofp %66 : vector<8x128xi32> to vector<8x128xf32>
    %68 = arith.truncf %67 : vector<8x128xf32> to vector<8x128xbf16>
    %c6 = arith.constant 6 : index
    %c0_20 = arith.constant 0 : index
    %c0_21 = arith.constant 0 : index
    %69 = vector.load %arg2[%c6, %c0_20, %c0_21] : memref<8x128x256xbf16, #tpu.memory_space<vmem>>, vector<1x128x256xbf16>
    %70 = vector.shape_cast %69 : vector<1x128x256xbf16> to vector<128x256xbf16>
    %cst_22 = arith.constant dense<0.000000e+00> : vector<8x256xf32>
    %71 = tpu.matmul %68, %70, %cst_22 {dimension_numbers = #tpu.dot_dimension_numbers<[1], [0], [0], [1], [0, 0, 1, 1], [], []>} : vector<8x128xbf16>, vector<128x256xbf16>, vector<8x256xf32> -> vector<8x256xf32>
    %72 = arith.addf %62, %71 : vector<8x256xf32>
    %73 = vector.extract_strided_slice %0 {offsets = [0, 7], sizes = [8, 1], strides = [1, 1]} : vector<8x8xi32> to vector<8x1xi32>
    %74 = vector.broadcast %73 : vector<8x1xi32> to vector<8x128xi32>
    %75 = arith.cmpi eq, %1, %74 : vector<8x128xi32>
    %76 = arith.extui %75 : vector<8x128xi1> to vector<8x128xi32>
    %77 = arith.sitofp %76 : vector<8x128xi32> to vector<8x128xf32>
    %78 = arith.truncf %77 : vector<8x128xf32> to vector<8x128xbf16>
    %c7 = arith.constant 7 : index
    %c0_23 = arith.constant 0 : index
    %c0_24 = arith.constant 0 : index
    %79 = vector.load %arg2[%c7, %c0_23, %c0_24] : memref<8x128x256xbf16, #tpu.memory_space<vmem>>, vector<1x128x256xbf16>
    %80 = vector.shape_cast %79 : vector<1x128x256xbf16> to vector<128x256xbf16>
    %cst_25 = arith.constant dense<0.000000e+00> : vector<8x256xf32>
    %81 = tpu.matmul %78, %80, %cst_25 {dimension_numbers = #tpu.dot_dimension_numbers<[1], [0], [0], [1], [0, 0, 1, 1], [], []>} : vector<8x128xbf16>, vector<128x256xbf16>, vector<8x256xf32> -> vector<8x256xf32>
    %82 = arith.addf %72, %81 : vector<8x256xf32>
    %c0_26 = arith.constant 0 : index
    %c0_27 = arith.constant 0 : index
    %83 = vector.load %arg3[%c0_26, %c0_27] : memref<1x256xf32, #tpu.memory_space<vmem>>, vector<1x256xf32>
    %84 = vector.broadcast %83 : vector<1x256xf32> to vector<8x256xf32>
    %85 = arith.addf %82, %84 : vector<8x256xf32>
    %cst_28 = arith.constant 0.000000e+00 : f32
    %86 = vector.broadcast %cst_28 : f32 to vector<8x256xf32>
    %87 = arith.maximumf %85, %86 : vector<8x256xf32>
    %88 = arith.truncf %87 : vector<8x256xf32> to vector<8x256xbf16>
    %c0_29 = arith.constant 0 : index
    %c0_30 = arith.constant 0 : index
    %89 = vector.load %arg4[%c0_29, %c0_30] : memref<256x128xbf16, #tpu.memory_space<vmem>>, vector<256x128xbf16>
    %cst_31 = arith.constant dense<0.000000e+00> : vector<8x128xf32>
    %90 = tpu.matmul %88, %89, %cst_31 {dimension_numbers = #tpu.dot_dimension_numbers<[1], [0], [0], [1], [0, 0, 1, 1], [], []>} : vector<8x256xbf16>, vector<256x128xbf16>, vector<8x128xf32> -> vector<8x128xf32>
    %c0_32 = arith.constant 0 : index
    %c0_33 = arith.constant 0 : index
    %91 = vector.load %arg5[%c0_32, %c0_33] : memref<1x128xf32, #tpu.memory_space<vmem>>, vector<1x128xf32>
    %92 = vector.broadcast %91 : vector<1x128xf32> to vector<8x128xf32>
    %93 = arith.addf %90, %92 : vector<8x128xf32>
    %cst_34 = arith.constant 0.000000e+00 : f32
    %94 = vector.broadcast %cst_34 : f32 to vector<8x128xf32>
    %95 = arith.maximumf %93, %94 : vector<8x128xf32>
    %96 = arith.truncf %95 : vector<8x128xf32> to vector<8x128xbf16>
    %c0_35 = arith.constant 0 : index
    %c0_36 = arith.constant 0 : index
    %97 = vector.load %arg6[%c0_35, %c0_36] : memref<128x128xbf16, #tpu.memory_space<vmem>>, vector<128x128xbf16>
    %cst_37 = arith.constant dense<0.000000e+00> : vector<8x128xf32>
    %98 = tpu.matmul %96, %97, %cst_37 {dimension_numbers = #tpu.dot_dimension_numbers<[1], [0], [0], [1], [0, 0, 1, 1], [], []>} : vector<8x128xbf16>, vector<128x128xbf16>, vector<8x128xf32> -> vector<8x128xf32>
    %c0_38 = arith.constant 0 : index
    %c0_39 = arith.constant 0 : index
    %99 = vector.load %arg7[%c0_38, %c0_39] : memref<1x128xf32, #tpu.memory_space<vmem>>, vector<1x128xf32>
    %100 = vector.broadcast %99 : vector<1x128xf32> to vector<8x128xf32>
    %101 = arith.addf %98, %100 : vector<8x128xf32>
    %cst_40 = arith.constant 0.000000e+00 : f32
    %102 = vector.broadcast %cst_40 : f32 to vector<8x128xf32>
    %103 = arith.maximumf %101, %102 : vector<8x128xf32>
    %104 = arith.truncf %103 : vector<8x128xf32> to vector<8x128xbf16>
    %c0_41 = arith.constant 0 : index
    %c0_42 = arith.constant 0 : index
    %105 = vector.load %arg8[%c0_41, %c0_42] : memref<128x128xbf16, #tpu.memory_space<vmem>>, vector<128x128xbf16>
    %cst_43 = arith.constant dense<0.000000e+00> : vector<8x128xf32>
    %106 = tpu.matmul %104, %105, %cst_43 {dimension_numbers = #tpu.dot_dimension_numbers<[1], [0], [0], [1], [0, 0, 1, 1], [], []>} : vector<8x128xbf16>, vector<128x128xbf16>, vector<8x128xf32> -> vector<8x128xf32>
    %c0_44 = arith.constant 0 : index
    %c0_45 = arith.constant 0 : index
    %107 = vector.load %arg9[%c0_44, %c0_45] : memref<1x128xf32, #tpu.memory_space<vmem>>, vector<1x128xf32>
    %108 = vector.broadcast %107 : vector<1x128xf32> to vector<8x128xf32>
    %109 = arith.addf %106, %108 : vector<8x128xf32>
    %110 = arith.extf %96 : vector<8x128xbf16> to vector<8x128xf32>
    %111 = arith.addf %109, %110 : vector<8x128xf32>
    %cst_46 = arith.constant 0.000000e+00 : f32
    %112 = vector.broadcast %cst_46 : f32 to vector<8x128xf32>
    %113 = arith.maximumf %111, %112 : vector<8x128xf32>
    %114 = arith.truncf %113 : vector<8x128xf32> to vector<8x128xbf16>
    %c0_47 = arith.constant 0 : index
    %c0_48 = arith.constant 0 : index
    %115 = vector.load %arg10[%c0_47, %c0_48] : memref<128x256xbf16, #tpu.memory_space<vmem>>, vector<128x256xbf16>
    %cst_49 = arith.constant dense<0.000000e+00> : vector<8x256xf32>
    %116 = tpu.matmul %114, %115, %cst_49 {dimension_numbers = #tpu.dot_dimension_numbers<[1], [0], [0], [1], [0, 0, 1, 1], [], []>} : vector<8x128xbf16>, vector<128x256xbf16>, vector<8x256xf32> -> vector<8x256xf32>
    %c0_50 = arith.constant 0 : index
    %c0_51 = arith.constant 0 : index
    %117 = vector.load %arg11[%c0_50, %c0_51] : memref<1x256xf32, #tpu.memory_space<vmem>>, vector<1x256xf32>
    %118 = vector.broadcast %117 : vector<1x256xf32> to vector<8x256xf32>
    %119 = arith.addf %116, %118 : vector<8x256xf32>
    %120 = arith.extf %88 : vector<8x256xbf16> to vector<8x256xf32>
    %121 = arith.addf %119, %120 : vector<8x256xf32>
    %cst_52 = arith.constant 0.000000e+00 : f32
    %122 = vector.broadcast %cst_52 : f32 to vector<8x256xf32>
    %123 = arith.maximumf %121, %122 : vector<8x256xf32>
    %124 = arith.truncf %123 : vector<8x256xf32> to vector<8x256xbf16>
    %c0_53 = arith.constant 0 : index
    %c0_54 = arith.constant 0 : index
    %125 = vector.load %arg12[%c0_53, %c0_54] : memref<256x128xbf16, #tpu.memory_space<vmem>>, vector<256x128xbf16>
    %cst_55 = arith.constant dense<0.000000e+00> : vector<8x128xf32>
    %126 = tpu.matmul %124, %125, %cst_55 {dimension_numbers = #tpu.dot_dimension_numbers<[1], [0], [0], [1], [0, 0, 1, 1], [], []>} : vector<8x256xbf16>, vector<256x128xbf16>, vector<8x128xf32> -> vector<8x128xf32>
    %c0_56 = arith.constant 0 : index
    %c0_57 = arith.constant 0 : index
    %127 = vector.load %arg13[%c0_56, %c0_57] : memref<1x128xf32, #tpu.memory_space<vmem>>, vector<1x128xf32>
    %128 = vector.broadcast %127 : vector<1x128xf32> to vector<8x128xf32>
    %129 = arith.addf %126, %128 : vector<8x128xf32>
    %c0_58 = arith.constant 0 : index
    %c0_59 = arith.constant 0 : index
    %130 = vector.load %arg14[%c0_58, %c0_59] : memref<8x128xf32, #tpu.memory_space<vmem>>, vector<8x128xf32>
    tpu.vector_store %arg14[%c0_58, %c0_59], %129 {strides = array<i32>} : memref<8x128xf32, #tpu.memory_space<vmem>>, vector<8x128xf32>,
    return
  }
  func.func @transform_0(%arg0: i32) -> (i32, i32) {
    %c0_i32 = arith.constant 0 : i32
    %c0_i32_0 = arith.constant 0 : i32
    return %arg0, %c0_i32 : i32, i32
  }
  func.func @transform_1(%arg0: i32) -> (i32, i32, i32) {
    %c0_i32 = arith.constant 0 : i32
    %c0_i32_0 = arith.constant 0 : i32
    %c0_i32_1 = arith.constant 0 : i32
    %c0_i32_2 = arith.constant 0 : i32
    return %c0_i32, %c0_i32_0, %c0_i32_1 : i32, i32, i32
  }
  func.func @transform_2(%arg0: i32) -> (i32, i32) {
    %c0_i32 = arith.constant 0 : i32
    %c0_i32_0 = arith.constant 0 : i32
    %c0_i32_1 = arith.constant 0 : i32
    return %c0_i32, %c0_i32_0 : i32, i32
  }
  func.func @transform_3(%arg0: i32) -> (i32, i32) {
    %c0_i32 = arith.constant 0 : i32
    %c0_i32_0 = arith.constant 0 : i32
    %c0_i32_1 = arith.constant 0 : i32
    return %c0_i32, %c0_i32_0 : i32, i32
  }
  func.func @transform_4(%arg0: i32) -> (i32, i32) {
    %c0_i32 = arith.constant 0 : i32
    %c0_i32_0 = arith.constant 0 : i32
    %c0_i32_1 = arith.constant 0 : i32
    return %c0_i32, %c0_i32_0 : i32, i32
  }
  func.func @transform_5(%arg0: i32) -> (i32, i32) {
    %c0_i32 = arith.constant 0 : i32
    %c0_i32_0 = arith.constant 0 : i32
    %c0_i32_1 = arith.constant 0 : i32
    return %c0_i32, %c0_i32_0 : i32, i32
  }
  func.func @transform_6(%arg0: i32) -> (i32, i32) {
    %c0_i32 = arith.constant 0 : i32
    %c0_i32_0 = arith.constant 0 : i32
    %c0_i32_1 = arith.constant 0 : i32
    return %c0_i32, %c0_i32_0 : i32, i32
  }
  func.func @transform_7(%arg0: i32) -> (i32, i32) {
    %c0_i32 = arith.constant 0 : i32
    %c0_i32_0 = arith.constant 0 : i32
    %c0_i32_1 = arith.constant 0 : i32
    return %c0_i32, %c0_i32_0 : i32, i32
  }
  func.func @transform_8(%arg0: i32) -> (i32, i32) {
    %c0_i32 = arith.constant 0 : i32
    %c0_i32_0 = arith.constant 0 : i32
    %c0_i32_1 = arith.constant 0 : i32
    return %c0_i32, %c0_i32_0 : i32, i32
  }
  func.func @transform_9(%arg0: i32) -> (i32, i32) {
    %c0_i32 = arith.constant 0 : i32
    %c0_i32_0 = arith.constant 0 : i32
    %c0_i32_1 = arith.constant 0 : i32
    return %c0_i32, %c0_i32_0 : i32, i32
  }
  func.func @transform_10(%arg0: i32) -> (i32, i32) {
    %c0_i32 = arith.constant 0 : i32
    %c0_i32_0 = arith.constant 0 : i32
    %c0_i32_1 = arith.constant 0 : i32
    return %c0_i32, %c0_i32_0 : i32, i32
  }
  func.func @transform_11(%arg0: i32) -> (i32, i32) {
    %c0_i32 = arith.constant 0 : i32
    %c0_i32_0 = arith.constant 0 : i32
    %c0_i32_1 = arith.constant 0 : i32
    return %c0_i32, %c0_i32_0 : i32, i32
  }
  func.func @transform_12(%arg0: i32) -> (i32, i32) {
    %c0_i32 = arith.constant 0 : i32
    %c0_i32_0 = arith.constant 0 : i32
    %c0_i32_1 = arith.constant 0 : i32
    return %c0_i32, %c0_i32_0 : i32, i32
  }
  func.func @transform_13(%arg0: i32) -> (i32, i32) {
    %c0_i32 = arith.constant 0 : i32
    %c0_i32_0 = arith.constant 0 : i32
    return %arg0, %c0_i32 : i32, i32
  }
}

</mosaic_0001>

<bundles_post_ra>
// kernel: tpu_custom_call.1
= control target key start
LH: loop header
LB: loop body
LE: loop exit
PB: predicated region body
PF: predicated region fallthrough
CT: control target
= control target key end

     0   :  { %18 = vsyncpa [#allocation3], 0  ;;  %s3188_s0 = inlined_call_operand.hbm [shape: s32[8,8], index: 0, kind: input, shape index: {}]   ;;  %s3189_s1 = inlined_call_operand.hbm [shape: bf16[8,128,256], index: 1, kind: input, shape index: {}]   ;;  %s3190_s2 = inlined_call_operand.vmem [shape: f32[1,256], index: 2, kind: input, shape index: {}]   ;;  %s3191_s3 = inlined_call_operand.hbm [shape: bf16[256,128], index: 3, kind: input, shape index: {}]   ;;  %s3192_s4 = inlined_call_operand.vmem [shape: f32[1,128], index: 4, kind: input, shape index: {}]   ;;  %s3193_s5 = inlined_call_operand.hbm [shape: bf16[128,128], index: 5, kind: input, shape index: {}]   ;;  %s3194_s6 = inlined_call_operand.vmem [shape: f32[1,128], index: 6, kind: input, shape index: {}]   ;;  %s3195_s7 = inlined_call_operand.hbm [shape: bf16[128,128], index: 7, kind: input, shape index: {}]   ;;  %s3196_s8 = inlined_call_operand.vmem [shape: f32[1,128], index: 8, kind: input, shape index: {}]   ;;  %s3197_s9 = inlined_call_operand.hbm [shape: bf16[128,256], index: 9, kind: input, shape index: {}]   ;;  %s3198_s10 = inlined_call_operand.vmem [shape: f32[1,256], index: 10, kind: input, shape index: {}]   ;;  %s3199_s11 = inlined_call_operand.hbm [shape: bf16[256,128], index: 11, kind: input, shape index: {}]   ;;  %s3200_s12 = inlined_call_operand.vmem [shape: f32[1,128], index: 12, kind: input, shape index: {}]   ;;  %s3201_s13 = inlined_call_operand.hbm [shape: f32[8,128], index: 13, kind: output, shape index: {}]  }
   0x1   :  { %19 = vsyncpa [#allocation6], 0 }
   0x2   :  { %20 = vsyncpa [#allocation9], 0 }
   0x3   :  { %21 = vsyncpa [#allocation12], 0 }
   0x4   :  { %22 = vsyncpa [#allocation4], 0  ;;  %s2891_s25 = smov [#allocation5]   ;;  %s2705_s29 = scalar_lea.hbm %s3189_s1, 16384 }
   0x5   :  { %s38_s26 = sshll.u32 %s2891_s25, 4  ;;  %p2706_p0 = scmp.ne.s32.totalorder %s3189_s1, %s2705_s29  ;;  %s39_s26 = int_to_ptr.vmem [resolvable:$true] %s38_s26 }
   0x6   :  { %p2709_p1 = scmp.lt.u32.totalorder %s2705_s29, %s3189_s1 }
   0x8   :  { %p2711_p2 = pnand %p2709_p1, %p2706_p0 }
   0xa   :  { %2714 = shalt.err (!%p2711_p2)
}
   0xb   :  { %s2715_s17 = scalar_lea.vmem %s39_s26, 16384  ;;  %p2720_p4 = scmp.lt.s32.totalorder %s39_s26, %s39_s26 }
   0xc   :  { %p2716_p3 = scmp.ne.s32.totalorder %s39_s26, %s2715_s17  ;;  %p2721_p5 = scmp.lt.s32.totalorder %s2715_s17, %s2715_s17 }
   0xe   :  { %p2722_p6 = por %p2721_p5, %p2720_p4 }
  0x10   :  { %p2723_p7 = pnand %p2722_p6, %p2716_p3 }
  0x12   :  { %2726 = shalt.err (!%p2723_p7)
}
  0x13   :  { %s2892_s18 = smov 128   ;;  %s2893_s19 = smov 8  }
  0x14   :  { %44 = dma.hbm_to_vmem [thread:$0]  %s3189_s1, 16384, %s39_s26, [#allocation6], %s2892_s18, %s2892_s18, %s2893_s19  }
  0x15   :  { %s2894_s22 = smov [#allocation8]   ;;  %s2895_s24 = smov [#allocation11]  }
  0x16   :  { %s66_s23 = sshll.u32 %s2894_s22, 4  ;;  %s94_s25 = sshll.u32 %s2895_s24, 4  ;;  %s67_s23 = int_to_ptr.vmem [resolvable:$true] %s66_s23  ;;  %s95_s25 = int_to_ptr.vmem [resolvable:$true] %s94_s25 }
  0x17   :  { %s2727_s29 = scalar_lea.hbm %s3193_s5, 1024 }
  0x18   :  { %p2728_p8 = scmp.ne.s32.totalorder %s3193_s5, %s2727_s29  ;;  %p2731_p9 = scmp.lt.u32.totalorder %s2727_s29, %s3193_s5 }
  0x1a   :  { %p2733_p10 = pnand %p2731_p9, %p2728_p8 }
  0x1c   :  { %2736 = shalt.err (!%p2733_p10)
}
  0x1d   :  { %s2737_s1 = scalar_lea.vmem %s67_s23, 1024  ;;  %p2742_p12 = scmp.lt.s32.totalorder %s67_s23, %s67_s23 }
  0x1e   :  { %p2738_p11 = scmp.ne.s32.totalorder %s67_s23, %s2737_s1  ;;  %p2743_p13 = scmp.lt.s32.totalorder %s2737_s1, %s2737_s1 }
  0x20   :  { %p2744_p0 = por %p2743_p13, %p2742_p12 }
  0x22   :  { %p2745_p1 = pnand %p2744_p0, %p2738_p11 }
  0x24   :  { %2748 = shalt.err (!%p2745_p1)
}
  0x25   :  { %s2896_s26 = smov 64   ;;  %s2897_s17 = smov 4  }
  0x26   :  { %72 = dma.hbm_to_vmem [thread:$0]  %s3193_s5, 1024, %s67_s23, [#allocation9], %s2896_s26, %s2896_s26, %s2897_s17  }
  0x27   :  { %s2749_s27 = scalar_lea.hbm %s3197_s9, 2048 }
  0x28   :  { %p2750_p2 = scmp.ne.s32.totalorder %s3197_s9, %s2749_s27  ;;  %p2753_p3 = scmp.lt.u32.totalorder %s2749_s27, %s3197_s9 }
  0x2a   :  { %p2755_p4 = pnand %p2753_p3, %p2750_p2 }
  0x2c   :  { %2758 = shalt.err (!%p2755_p4)
}
  0x2d   :  { %s2759_s15 = scalar_lea.vmem %s95_s25, 2048  ;;  %p2764_p6 = scmp.lt.s32.totalorder %s95_s25, %s95_s25 }
  0x2e   :  { %p2760_p5 = scmp.ne.s32.totalorder %s95_s25, %s2759_s15  ;;  %p2765_p7 = scmp.lt.s32.totalorder %s2759_s15, %s2759_s15 }
  0x30   :  { %p2766_p8 = por %p2765_p7, %p2764_p6 }
  0x32   :  { %p2767_p9 = pnand %p2766_p8, %p2760_p5 }
  0x34   :  { %2770 = shalt.err (!%p2767_p9)
}
  0x35   :  { %100 = dma.hbm_to_vmem [thread:$0]  %s3197_s9, 2048, %s95_s25, [#allocation12], %s2892_s18, %s2892_s18, %s2893_s19  }
  0x36   :  { %s2898_s16 = smov [#allocation2]   ;;  %s2899_s20 = smov [#allocation7]  }
  0x37   :  { %s29_s1 = sshll.u32 %s2898_s16, 4  ;;  %s52_s21 = sshll.u32 %s2899_s20, 4  ;;  %s30_s1 = int_to_ptr.vmem [resolvable:$true] %s29_s1  ;;  %s53_s21 = int_to_ptr.vmem [resolvable:$true] %s52_s21 }
  0x38   :  { %s2771_s27 = scalar_lea.hbm %s3188_s0, 128 }
  0x39   :  { %p2772_p10 = scmp.ne.s32.totalorder %s3188_s0, %s2771_s27  ;;  %p2775_p11 = scmp.lt.u32.totalorder %s2771_s27, %s3188_s0 }
  0x3b   :  { %p2777_p12 = pnand %p2775_p11, %p2772_p10 }
  0x3d   :  { %2780 = shalt.err (!%p2777_p12)
}
  0x3e   :  { %s2781_s9 = scalar_lea.vmem %s30_s1, 128  ;;  %p2786_p0 = scmp.lt.s32.totalorder %s30_s1, %s30_s1 }
  0x3f   :  { %p2782_p13 = scmp.ne.s32.totalorder %s30_s1, %s2781_s9  ;;  %p2787_p1 = scmp.lt.s32.totalorder %s2781_s9, %s2781_s9 }
  0x41   :  { %p2788_p2 = por %p2787_p1, %p2786_p0 }
  0x43   :  { %p2789_p3 = pnand %p2788_p2, %p2782_p13 }
  0x45   :  { %2792 = shalt.err (!%p2789_p3)
}
  0x46   :  { %32 = dma.hbm_to_vmem [thread:$0]  %s3188_s0, 128, %s30_s1, [#allocation3]  }
  0x47   :  { %s2793_s5 = scalar_lea.hbm %s3191_s3, 2048 }
  0x48   :  { %p2794_p4 = scmp.ne.s32.totalorder %s3191_s3, %s2793_s5  ;;  %p2797_p5 = scmp.lt.u32.totalorder %s2793_s5, %s3191_s3 }
  0x4a   :  { %p2799_p6 = pnand %p2797_p5, %p2794_p4 }
  0x4c   :  { %2802 = shalt.err (!%p2799_p6)
}
  0x4d   :  { %s2803_s24 = scalar_lea.vmem %s53_s21, 2048  ;;  %p2808_p8 = scmp.lt.s32.totalorder %s53_s21, %s53_s21 }
  0x4e   :  { %p2804_p7 = scmp.ne.s32.totalorder %s53_s21, %s2803_s24  ;;  %p2809_p9 = scmp.lt.s32.totalorder %s2803_s24, %s2803_s24 }
  0x50   :  { %p2810_p10 = por %p2809_p9, %p2808_p8 }
  0x52   :  { %p2811_p11 = pnand %p2810_p10, %p2804_p7 }
  0x54   :  { %2814 = shalt.err (!%p2811_p11)
}
  0x55   :  { %58 = dma.hbm_to_vmem [thread:$0]  %s3191_s3, 2048, %s53_s21, [#allocation6], %s2896_s26, %s2896_s26, %s2897_s17  }
  0x56   :  { %s2900_s27 = smov [#allocation10]   ;;  %s2901_s29 = smov [#allocation13]  }
  0x57   :  { %s80_s28 = sshll.u32 %s2900_s27, 4  ;;  %s108_s30 = sshll.u32 %s2901_s29, 4  ;;  %s81_s28 = int_to_ptr.vmem [resolvable:$true] %s80_s28  ;;  %s109_s30 = int_to_ptr.vmem [resolvable:$true] %s108_s30 }
  0x58   :  { %s2815_s18 = scalar_lea.hbm %s3195_s7, 1024 }
  0x59   :  { %p2816_p12 = scmp.ne.s32.totalorder %s3195_s7, %s2815_s18  ;;  %p2819_p13 = scmp.lt.u32.totalorder %s2815_s18, %s3195_s7 }
  0x5b   :  { %p2821_p0 = pnand %p2819_p13, %p2816_p12 }
  0x5d   :  { %2824 = shalt.err (!%p2821_p0)
}
  0x5e   :  { %s2825_s3 = scalar_lea.vmem %s81_s28, 1024  ;;  %p2830_p2 = scmp.lt.s32.totalorder %s81_s28, %s81_s28 }
  0x5f   :  { %p2826_p1 = scmp.ne.s32.totalorder %s81_s28, %s2825_s3  ;;  %p2831_p3 = scmp.lt.s32.totalorder %s2825_s3, %s2825_s3 }
  0x61   :  { %p2832_p4 = por %p2831_p3, %p2830_p2 }
  0x63   :  { %p2833_p5 = pnand %p2832_p4, %p2826_p1 }
  0x65   :  { %2836 = shalt.err (!%p2833_p5)
}
  0x66   :  { %86 = dma.hbm_to_vmem [thread:$0]  %s3195_s7, 1024, %s81_s28, [#allocation9], %s2896_s26, %s2896_s26, %s2897_s17  }
  0x67   :  { %s2837_s22 = scalar_lea.hbm %s3199_s11, 2048 }
  0x68   :  { %p2838_p6 = scmp.ne.s32.totalorder %s3199_s11, %s2837_s22  ;;  %p2841_p7 = scmp.lt.u32.totalorder %s2837_s22, %s3199_s11 }
  0x6a   :  { %p2843_p8 = pnand %p2841_p7, %p2838_p6 }
  0x6c   :  { %2846 = shalt.err (!%p2843_p8)
}
  0x6d   :  { %s2847_s29 = scalar_lea.vmem %s109_s30, 2048  ;;  %p2852_p10 = scmp.lt.s32.totalorder %s109_s30, %s109_s30 }
  0x6e   :  { %p2848_p9 = scmp.ne.s32.totalorder %s109_s30, %s2847_s29  ;;  %p2853_p11 = scmp.lt.s32.totalorder %s2847_s29, %s2847_s29 }
  0x70   :  { %p2854_p12 = por %p2853_p11, %p2852_p10 }
  0x72   :  { %p2855_p13 = pnand %p2854_p12, %p2848_p9 }
  0x74   :  { %2858 = shalt.err (!%p2855_p13)
}
  0x75   :  { %114 = dma.hbm_to_vmem [thread:$0]  %s3199_s11, 2048, %s109_s30, [#allocation12], %s2896_s26, %s2896_s26, %s2897_s17  }
  0x76   :  { %2881 = dma.done.wait [#allocation3], 128  }
  0x77   :  { %2882 = vsyncadd [#allocation3], 4294967168 }
  0x78   :  { %2883 = dma.done.wait [#allocation6], 18432  }
  0x79   :  { %2884 = vsyncadd [#allocation6], 4294948864 }
  0x7a   :  { %2885 = dma.done.wait [#allocation9], 2048  }
  0x7b   :  { %2886 = vsyncadd [#allocation9], 4294965248 }
  0x7c   :  { %2887 = dma.done.wait [#allocation12], 4096  }
  0x7d   :  { %2888 = vsyncadd [#allocation12], 4294963200  ;;  %v2902_v0 = vmov 1   ;;  %v2903_v1 = vmov 2   ;;  %v2904_v2 = vmov 0   ;;  %v139_v3 = vld [vmem:[#allocation2] sm:$0xff]  ;;  %v140_v43 = vlaneseq }
  0x7e   :  { %2432 = vset.pattern.permute.xlu0 %v2902_v0  ;;  %2434 = vset.pattern.permute.xlu1 %v2903_v1  ;;  %v2441_v4 = vld [vmem:[#allocation5 + $0x84] ss:$8 sps:$4 sm:$0xff]   ;;  %v2443_v5 = vld [vmem:[#allocation5 + $0x80] ss:$8 sps:$4 sm:$0xff]   ;;  %v2444_v6 = vld [vmem:[#allocation5 + $0x94] ss:$8 sps:$4 sm:$0xff]  }
  0x7f   :  { %301 = vmatprep.mubr.bf16.mxu0 %v2904_v2  ;;  %422 = vmatprep.mubr.bf16.mxu1 %v2904_v2  ;;  %v2446_v7 = vld [vmem:[#allocation5 + $0x90] ss:$8 sps:$4 sm:$0xff]   ;;  %v2447_v8 = vld [vmem:[#allocation5 + $0x4] ss:$8 sps:$4 sm:$0xff]   ;;  %v2449_v9 = vld [vmem:[#allocation5] ss:$8 sps:$4 sm:$0xff]  }
  0x80   :  { %166 = vperm.xlu0 %2432, %v139_v3   ;;  %432 = vperm.xlu1 %2434, %v139_v3   ;;  %v2905_v10 = vmov 3   ;;  %v2450_v11 = vld [vmem:[#allocation5 + $0xa4] ss:$8 sps:$4 sm:$0xff]   ;;  %v2453_v12 = vld [vmem:[#allocation5 + $0x14] ss:$8 sps:$4 sm:$0xff]   ;;  %v2906_v17 = vmov 4  }
  0x81   :  { %269 = vmatprep.subr.bf16.mxu0 %v2441_v4  ;;  %390 = vmatprep.subr.bf16.mxu1 %v2447_v8  ;;  %v2452_v13 = vld [vmem:[#allocation5 + $0xa0] ss:$8 sps:$4 sm:$0xff]   ;;  %v2455_v14 = vld [vmem:[#allocation5 + $0x10] ss:$8 sps:$4 sm:$0xff]   ;;  %v2456_v15 = vld [vmem:[#allocation5 + $0xb4] ss:$8 sps:$4 sm:$0xff]  }
  0x82   :  { %270 = vmatpush1.bf16.msra.mxu0 %v2443_v5  ;;  %391 = vmatpush1.bf16.msra.mxu1 %v2449_v9  ;;  %v2459_v16 = vld [vmem:[#allocation5 + $0x24] ss:$8 sps:$4 sm:$0xff]   ;;  %v2907_v18 = vmov 5   ;;  %v2458_v19 = vld [vmem:[#allocation5 + $0xb0] ss:$8 sps:$4 sm:$0xff]   ;;  %v2908_v23 = vmov 6  }
  0x83   :  { %271 = vmatprep.subr.bf16.mxu0 %v2444_v6  ;;  %392 = vmatprep.subr.bf16.mxu1 %v2453_v12  ;;  %v2461_v20 = vld [vmem:[#allocation5 + $0x20] ss:$8 sps:$4 sm:$0xff]   ;;  %v2462_v21 = vld [vmem:[#allocation5 + $0xc4] ss:$8 sps:$4 sm:$0xff]   ;;  %v2465_v22 = vld [vmem:[#allocation5 + $0x34] ss:$8 sps:$4 sm:$0xff]  }
  0x84   :  { %2433 = vset.pattern.permute.xlu0 %v2904_v2  ;;  %2435 = vset.pattern.permute.xlu1 %v2905_v10  ;;  %v2909_v24 = vmov 7   ;;  %v2464_v25 = vld [vmem:[#allocation5 + $0xc0] ss:$8 sps:$4 sm:$0xff]   ;;  %v2467_v26 = vld [vmem:[#allocation5 + $0x30] ss:$8 sps:$4 sm:$0xff]   ;;  %v3090_v44 = vand.u32 127, %v140_v43 }
  0x85   :  { %143 = vperm.xlu0 %2433, %v139_v3   ;;  %579 = vperm.xlu1 %2435, %v139_v3   ;;  %v2468_v27 = vld [vmem:[#allocation5 + $0xd4] ss:$8 sps:$4 sm:$0xff]   ;;  %v2471_v28 = vld [vmem:[#allocation5 + $0x44] ss:$8 sps:$4 sm:$0xff]   ;;  %v2470_v29 = vld [vmem:[#allocation5 + $0xd0] ss:$8 sps:$4 sm:$0xff]  }
  0x86   :  { %272 = vmatpush1.bf16.msra.mxu0 %v2446_v7  ;;  %393 = vmatpush1.bf16.msra.mxu1 %v2455_v14  ;;  %v2473_v30 = vld [vmem:[#allocation5 + $0x40] ss:$8 sps:$4 sm:$0xff]   ;;  %v2474_v31 = vld [vmem:[#allocation5 + $0xe4] ss:$8 sps:$4 sm:$0xff]   ;;  %v2477_v32 = vld [vmem:[#allocation5 + $0x54] ss:$8 sps:$4 sm:$0xff]  }
  0x87   :  { %273 = vmatprep.subr.bf16.mxu0 %v2450_v11  ;;  %394 = vmatprep.subr.bf16.mxu1 %v2459_v16  ;;  %v2476_v33 = vld [vmem:[#allocation5 + $0xe0] ss:$8 sps:$4 sm:$0xff]   ;;  %v2479_v34 = vld [vmem:[#allocation5 + $0x50] ss:$8 sps:$4 sm:$0xff]   ;;  %v2480_v35 = vld [vmem:[#allocation5 + $0xf4] ss:$8 sps:$4 sm:$0xff]  }
  0x88   :  { %v2483_v36 = vld [vmem:[#allocation5 + $0x64] ss:$8 sps:$4 sm:$0xff]   ;;  %v2482_v37 = vld [vmem:[#allocation5 + $0xf0] ss:$8 sps:$4 sm:$0xff]   ;;  %v2485_v38 = vld [vmem:[#allocation5 + $0x60] ss:$8 sps:$4 sm:$0xff]  }
  0x89   :  { %2436 = vset.pattern.permute.xlu1 %v2906_v17  ;;  %2437 = vset.pattern.permute.xlu0 %v2907_v18  ;;  %v2488_v39 = vld [vmem:[#allocation5 + $0x104] ss:$8 sps:$4 sm:$0xff]   ;;  %v2489_v40 = vld [vmem:[#allocation5 + $0x74] ss:$8 sps:$4 sm:$0xff]   ;;  %v2491_v41 = vld [vmem:[#allocation5 + $0x70] ss:$8 sps:$4 sm:$0xff]  }
  0x8a   :  { %726 = vperm.xlu1 %2436, %v139_v3   ;;  %873 = vperm.xlu0 %2437, %v139_v3   ;;  %v2497_v42 = vld [vmem:[#allocation5 + $0x184] ss:$8 sps:$4 sm:$0xff]   ;;  %v2486_v46 = vld [vmem:[#allocation5 + $0x100] ss:$8 sps:$4 sm:$0xff]   ;;  %v2494_v47 = vld [vmem:[#allocation5 + $0x114] ss:$8 sps:$4 sm:$0xff]  }
  0x8b   :  { %274 = vmatpush1.bf16.msra.mxu0 %v2452_v13  ;;  %395 = vmatpush1.bf16.msra.mxu1 %v2461_v20  ;;  %v2910_v48 = vmov 1.0|1.0   ;;  %v2492_v49 = vld [vmem:[#allocation5 + $0x110] ss:$8 sps:$4 sm:$0xff]   ;;  %v2495_v51 = vld [vmem:[#allocation5 + $0x180] ss:$8 sps:$4 sm:$0xff]  }
  0x8c   :  { %275 = vmatprep.subr.bf16.mxu0 %v2456_v15  ;;  %396 = vmatprep.subr.bf16.mxu1 %v2465_v22  ;;  %v2500_v52 = vld [vmem:[#allocation5 + $0x124] ss:$8 sps:$4 sm:$0xff]   ;;  %v2503_v53 = vld [vmem:[#allocation5 + $0x194] ss:$8 sps:$4 sm:$0xff]   ;;  %v2498_v54 = vld [vmem:[#allocation5 + $0x120] ss:$8 sps:$4 sm:$0xff]  }
  0x8d   :  { %v2501_v55 = vld [vmem:[#allocation5 + $0x190] ss:$8 sps:$4 sm:$0xff]   ;;  %v2506_v56 = vld [vmem:[#allocation5 + $0x134] ss:$8 sps:$4 sm:$0xff]   ;;  %v2509_v57 = vld [vmem:[#allocation5 + $0x1a4] ss:$8 sps:$4 sm:$0xff]  }
  0x8e   :  { %2438 = vset.pattern.permute.xlu1 %v2908_v23  ;;  %2440 = vset.pattern.permute.xlu0 %v2909_v24  ;;  %v2504_v58 = vld [vmem:[#allocation5 + $0x130] ss:$8 sps:$4 sm:$0xff]   ;;  %v2507_v59 = vld [vmem:[#allocation5 + $0x1a0] ss:$8 sps:$4 sm:$0xff]   ;;  %v2512_v60 = vld [vmem:[#allocation5 + $0x144] ss:$8 sps:$4 sm:$0xff]  }
  0x8f   :  { %1020 = vperm.xlu1 %2438, %v139_v3   ;;  %276 = vmatpush1.bf16.msra.mxu0 %v2458_v19  ;;  %v2515_v61 = vld [vmem:[#allocation5 + $0x1b4] ss:$8 sps:$4 sm:$0xff]   ;;  %v2510_v62 = vld [vmem:[#allocation5 + $0x140] ss:$8 sps:$4 sm:$0xff]   ;;  %v2513_v63 = vld [vmem:[#allocation5 + $0x1b0] ss:$8 sps:$4 sm:$0xff]  }
  0x90   :  { %277 = vmatprep.subr.bf16.mxu0 %v2462_v21  ;;  %397 = vmatpush1.bf16.msra.mxu1 %v2467_v26  ;;  %v2518_v0 = vld [vmem:[#allocation5 + $0x154] ss:$8 sps:$4 sm:$0xff]   ;;  %v2521_v1 = vld [vmem:[#allocation5 + $0x1c4] ss:$8 sps:$4 sm:$0xff]   ;;  %v2519_v4 = vld [vmem:[#allocation5 + $0x1c0] ss:$8 sps:$4 sm:$0xff]  }
  0x91   :  { %398 = vmatprep.subr.bf16.mxu1 %v2471_v28  ;;  %v2524_v5 = vld [vmem:[#allocation5 + $0x164] ss:$8 sps:$4 sm:$0xff]   ;;  %v2527_v6 = vld [vmem:[#allocation5 + $0x1d4] ss:$8 sps:$4 sm:$0xff]   ;;  %v2522_v7 = vld [vmem:[#allocation5 + $0x160] ss:$8 sps:$4 sm:$0xff]  }
  0x92   :  { %v2525_v8 = vld [vmem:[#allocation5 + $0x1d0] ss:$8 sps:$4 sm:$0xff]   ;;  %v2530_v9 = vld [vmem:[#allocation5 + $0x174] ss:$8 sps:$4 sm:$0xff]   ;;  %v2533_v11 = vld [vmem:[#allocation5 + $0x1e4] ss:$8 sps:$4 sm:$0xff]  }
  0x93   :  { %2439 = vset.pattern.permute.xlu1 %v2909_v24  ;;  %278 = vmatpush1.bf16.msra.mxu0 %v2464_v25  ;;  %v2528_v12 = vld [vmem:[#allocation5 + $0x170] ss:$8 sps:$4 sm:$0xff]   ;;  %v2531_v13 = vld [vmem:[#allocation5 + $0x1e0] ss:$8 sps:$4 sm:$0xff]   ;;  %v2536_v14 = vld [vmem:[#allocation5 + $0x204] ss:$8 sps:$4 sm:$0xff]  }
  0x94   :  { %1167 = vperm.xlu1 %2439, %v139_v3   ;;  %279 = vmatprep.subr.bf16.mxu0 %v2468_v27  ;;  %v2516_v3 = vld [vmem:[#allocation5 + $0x150] ss:$8 sps:$4 sm:$0xff]   ;;  %v2539_v15 = vld [vmem:[#allocation5 + $0x1f4] ss:$8 sps:$4 sm:$0xff]   ;;  %v2534_v17 = vld [vmem:[#allocation5 + $0x200] ss:$8 sps:$4 sm:$0xff]  }
  0x95   :  { %399 = vmatpush1.bf16.msra.mxu1 %v2473_v30  ;;  %v2537_v18 = vld [vmem:[#allocation5 + $0x1f0] ss:$8 sps:$4 sm:$0xff]   ;;  %v2542_v19 = vld [vmem:[#allocation5 + $0x214] ss:$8 sps:$4 sm:$0xff]   ;;  %v2545_v20 = vld [vmem:[#allocation5 + $0x284] ss:$8 sps:$4 sm:$0xff]  }
  0x96   :  { %400 = vmatprep.subr.bf16.mxu1 %v2477_v32  ;;  %v2540_v21 = vld [vmem:[#allocation5 + $0x210] ss:$8 sps:$4 sm:$0xff]   ;;  %v2543_v22 = vld [vmem:[#allocation5 + $0x280] ss:$8 sps:$4 sm:$0xff]   ;;  %v2548_v23 = vld [vmem:[#allocation5 + $0x224] ss:$8 sps:$4 sm:$0xff]  }
  0x97   :  { %280 = vmatpush1.bf16.msra.mxu0 %v2470_v29  ;;  %v2551_v24 = vld [vmem:[#allocation5 + $0x294] ss:$8 sps:$4 sm:$0xff]   ;;  %v2546_v25 = vld [vmem:[#allocation5 + $0x220] ss:$8 sps:$4 sm:$0xff]   ;;  %v2549_v26 = vld [vmem:[#allocation5 + $0x290] ss:$8 sps:$4 sm:$0xff]  }
  0x98   :  { %281 = vmatprep.subr.bf16.mxu0 %v2474_v31  ;;  %v2554_v27 = vld [vmem:[#allocation5 + $0x234] ss:$8 sps:$4 sm:$0xff]   ;;  %v2557_v28 = vld [vmem:[#allocation5 + $0x2a4] ss:$8 sps:$4 sm:$0xff]   ;;  %v2552_v29 = vld [vmem:[#allocation5 + $0x230] ss:$8 sps:$4 sm:$0xff]  }
  0x99   :  { %401 = vmatpush1.bf16.msra.mxu1 %v2479_v34  ;;  %v2555_v30 = vld [vmem:[#allocation5 + $0x2a0] ss:$8 sps:$4 sm:$0xff]   ;;  %v2560_v31 = vld [vmem:[#allocation5 + $0x244] ss:$8 sps:$4 sm:$0xff]   ;;  %v2563_v32 = vld [vmem:[#allocation5 + $0x2b4] ss:$8 sps:$4 sm:$0xff]  }
  0x9a   :  { %402 = vmatprep.subr.bf16.mxu1 %v2483_v36  ;;  %v2561_v34 = vld [vmem:[#allocation5 + $0x2b0] ss:$8 sps:$4 sm:$0xff]   ;;  %v2569_v36 = vld [vmem:[#allocation5 + $0x2c4] ss:$8 sps:$4 sm:$0xff]   ;;  %s2913_s19 = smov [#allocation14]  }
  0x9b   :  { %282 = vmatpush1.bf16.msra.mxu0 %v2476_v33  ;;  %v2558_v33 = vld [vmem:[#allocation5 + $0x240] ss:$8 sps:$4 sm:$0xff]   ;;  %s2075_s25 = sshll.u32 %s2913_s19, 4  ;;  %s2076_s25 = int_to_ptr.vmem [resolvable:$true] %s2075_s25 }
  0x9c   :  { %283 = vmatprep.subr.bf16.mxu0 %v2480_v35  ;;  %v2566_v35 = vld [vmem:[#allocation5 + $0x254] ss:$8 sps:$4 sm:$0xff]   ;;  %s2859_s15 = scalar_lea.vmem %s2076_s25, 128  ;;  %p2864_p1 = scmp.lt.s32.totalorder %s2076_s25, %s2076_s25 }
  0x9d   :  { %403 = vmatpush1.bf16.msra.mxu1 %v2485_v38  ;;  %v2567_v38 = vld [vmem:[#allocation5 + $0x2c0] ss:$8 sps:$4 sm:$0xff]   ;;  %p2860_p0 = scmp.ne.s32.totalorder %s2076_s25, %s2859_s15  ;;  %p2865_p2 = scmp.lt.s32.totalorder %s2859_s15, %s2859_s15 }
  0x9e   :  { %404 = vmatprep.subr.bf16.mxu1 %v2489_v40  ;;  %v2575_v40 = vld [vmem:[#allocation5 + $0x2d4] ss:$8 sps:$4 sm:$0xff]  }
  0x9f   :  { %284 = vmatpush1.bf16.msra.mxu0 %v2482_v37  ;;  %v2564_v37 = vld [vmem:[#allocation5 + $0x250] ss:$8 sps:$4 sm:$0xff]   ;;  %p2866_p3 = por %p2865_p2, %p2864_p1 }
  0xa0   :  { %535 = vmatprep.subr.bf16.mxu0 %v2488_v39  ;;  %v2572_v39 = vld [vmem:[#allocation5 + $0x264] ss:$8 sps:$4 sm:$0xff]  }
  0xa1   :  { %405 = vmatpush1.bf16.msra.mxu1 %v2491_v41  ;;  %v2570_v41 = vld [vmem:[#allocation5 + $0x260] ss:$8 sps:$4 sm:$0xff]   ;;  %p2867_p4 = pnand %p2866_p3, %p2860_p0 }
  0xa2   :  { %682 = vmatprep.subr.bf16.mxu1 %v2497_v42  ;;  %v2573_v42 = vld [vmem:[#allocation5 + $0x2d0] ss:$8 sps:$4 sm:$0xff]  }
  0xff   :  { %v167_v45 = vpop.permute.xlu0 %166  ;;  %v433_v10 = vpop.permute.xlu1 %432 }
 0x100   :  { %vm168_vm0 = vcmp.eq.s32.totalorder %v3090_v44, %v167_v45  ;;  %vm434_vm4 = vcmp.eq.s32.totalorder %v3090_v44, %v433_v10  ;;  %v2578_v45 = vld [vmem:[#allocation5 + $0x274] ss:$8 sps:$4 sm:$0xff]   ;;  %v2617_v10 = vld [vmem:[#allocation5 + $0x3c4] ss:$8 sps:$4 sm:$0xff]  }
 0x101   :  { %vm2105_vm1 = vmpackc.low %vm168_vm0, %vm168_vm0  ;;  %vm2912_vm0 = vmmov 0  }
 0x102   :  { %2106 = vmatmul.mubr.msk.bf16.vlgmr.msra.gmra.mrb[0].mxu0 %vm2105_vm1, %v2910_v48  ;;  %vm2142_vm5 = vmpackc.low %vm434_vm4, %vm434_vm4 }
 0x103   :  { %536 = vmatpush1.bf16.msra.mxu0 %v2486_v46  ;;  %567 = vmatprep.mubr.bf16.mxu0 %v2904_v2 }
 0x104   :  { %v144_v50 = vpop.permute.xlu0 %143  ;;  %537 = vmatprep.subr.bf16.mxu0 %v2494_v47  ;;  %v580_v16 = vpop.permute.xlu1 %579  ;;  %v2581_v47 = vld [vmem:[#allocation5 + $0x2e4] ss:$8 sps:$4 sm:$0xff]  }
 0x105   :  { %vm145_vm2 = vcmp.eq.s32.totalorder %v3090_v44, %v144_v50  ;;  %vm581_vm6 = vcmp.eq.s32.totalorder %v3090_v44, %v580_v16  ;;  %v2579_v50 = vld [vmem:[#allocation5 + $0x2e0] ss:$8 sps:$4 sm:$0xff]   ;;  %v2621_v16 = vld [vmem:[#allocation5 + $0x3d0] ss:$8 sps:$4 sm:$0xff]  }
 0x106   :  { %vm2123_vm3 = vmpackc.low %vm145_vm2, %vm145_vm2 }
 0x107   :  { %538 = vmatpush1.bf16.msra.mxu0 %v2492_v49  ;;  %2124 = vmatmul.mubr.msk.bf16.vlgmr.msra.gmra.mrb[0].mxu1 %vm2123_vm3, %v2910_v48  ;;  %vm2161_vm7 = vmpackc.low %vm581_vm6, %vm581_vm6  ;;  %v2576_v49 = vld [vmem:[#allocation5 + $0x270] ss:$8 sps:$4 sm:$0xff]  }
 0x108   :  { %683 = vmatpush1.bf16.msra.mxu1 %v2495_v51  ;;  %539 = vmatprep.subr.bf16.mxu0 %v2500_v52  ;;  %v2584_v51 = vld [vmem:[#allocation5 + $0x304] ss:$8 sps:$4 sm:$0xff]   ;;  %v2587_v52 = vld [vmem:[#allocation5 + $0x2f4] ss:$8 sps:$4 sm:$0xff]  }
 0x109   :  { %684 = vmatprep.subr.bf16.mxu1 %v2503_v53  ;;  %714 = vmatprep.mubr.bf16.mxu1 %v2904_v2  ;;  %v727_v46 = vpop.permute.xlu1 %726  ;;  %v874_v53 = vpop.permute.xlu0 %873 }
 0x10a   :  { %vm728_vm8 = vcmp.eq.s32.totalorder %v3090_v44, %v727_v46  ;;  %vm875_vm10 = vcmp.eq.s32.totalorder %v3090_v44, %v874_v53  ;;  %v2653_v46 = vld [vmem:[#allocation8 + $0x20] sm:$0xff]  }
 0x10b   :  { %540 = vmatpush1.bf16.msra.mxu0 %v2498_v54  ;;  %vm2180_vm9 = vmpackc.low %vm728_vm8, %vm728_vm8  ;;  %v2582_v54 = vld [vmem:[#allocation5 + $0x300] ss:$8 sps:$4 sm:$0xff]  }
 0x10c   :  { %685 = vmatpush1.bf16.msra.mxu1 %v2501_v55  ;;  %541 = vmatprep.subr.bf16.mxu0 %v2506_v56  ;;  %v2585_v55 = vld [vmem:[#allocation5 + $0x2f0] ss:$8 sps:$4 sm:$0xff]   ;;  %v2590_v56 = vld [vmem:[#allocation5 + $0x314] ss:$8 sps:$4 sm:$0xff]   ;;  %vm2199_vm11 = vmpackc.low %vm875_vm10, %vm875_vm10 }
 0x10d   :  { %686 = vmatprep.subr.bf16.mxu1 %v2509_v57  ;;  %v2593_v57 = vld [vmem:[#allocation5 + $0x384] ss:$8 sps:$4 sm:$0xff]  }
 0x10f   :  { %542 = vmatpush1.bf16.msra.mxu0 %v2504_v58  ;;  %v2588_v58 = vld [vmem:[#allocation5 + $0x310] ss:$8 sps:$4 sm:$0xff]  }
 0x110   :  { %687 = vmatpush1.bf16.msra.mxu1 %v2507_v59  ;;  %543 = vmatprep.subr.bf16.mxu0 %v2512_v60  ;;  %v2591_v59 = vld [vmem:[#allocation5 + $0x380] ss:$8 sps:$4 sm:$0xff]   ;;  %v2596_v60 = vld [vmem:[#allocation5 + $0x324] ss:$8 sps:$4 sm:$0xff]  }
 0x111   :  { %688 = vmatprep.subr.bf16.mxu1 %v2515_v61  ;;  %v2599_v61 = vld [vmem:[#allocation5 + $0x394] ss:$8 sps:$4 sm:$0xff]  }
 0x113   :  { %544 = vmatpush1.bf16.msra.mxu0 %v2510_v62  ;;  %v2594_v62 = vld [vmem:[#allocation5 + $0x320] ss:$8 sps:$4 sm:$0xff]  }
 0x114   :  { %689 = vmatpush1.bf16.msra.mxu1 %v2513_v63  ;;  %545 = vmatprep.subr.bf16.mxu0 %v2518_v0  ;;  %v2597_v63 = vld [vmem:[#allocation5 + $0x390] ss:$8 sps:$4 sm:$0xff]   ;;  %v2602_v0 = vld [vmem:[#allocation5 + $0x334] ss:$8 sps:$4 sm:$0xff]  }
 0x115   :  { %690 = vmatprep.subr.bf16.mxu1 %v2521_v1  ;;  %v2605_v1 = vld [vmem:[#allocation5 + $0x3a4] ss:$8 sps:$4 sm:$0xff]  }
 0x117   :  { %546 = vmatpush1.bf16.msra.mxu0 %v2516_v3  ;;  %v2600_v3 = vld [vmem:[#allocation5 + $0x330] ss:$8 sps:$4 sm:$0xff]  }
 0x118   :  { %691 = vmatpush1.bf16.msra.mxu1 %v2519_v4  ;;  %547 = vmatprep.subr.bf16.mxu0 %v2524_v5  ;;  %v2603_v4 = vld [vmem:[#allocation5 + $0x3a0] ss:$8 sps:$4 sm:$0xff]   ;;  %v2608_v5 = vld [vmem:[#allocation5 + $0x344] ss:$8 sps:$4 sm:$0xff]  }
 0x119   :  { %692 = vmatprep.subr.bf16.mxu1 %v2527_v6  ;;  %v2611_v6 = vld [vmem:[#allocation5 + $0x3b4] ss:$8 sps:$4 sm:$0xff]  }
 0x11b   :  { %548 = vmatpush1.bf16.msra.mxu0 %v2522_v7  ;;  %v2606_v7 = vld [vmem:[#allocation5 + $0x340] ss:$8 sps:$4 sm:$0xff]  }
 0x11c   :  { %693 = vmatpush1.bf16.msra.mxu1 %v2525_v8  ;;  %549 = vmatprep.subr.bf16.mxu0 %v2530_v9  ;;  %v2609_v8 = vld [vmem:[#allocation5 + $0x3b0] ss:$8 sps:$4 sm:$0xff]   ;;  %v2614_v9 = vld [vmem:[#allocation5 + $0x354] ss:$8 sps:$4 sm:$0xff]  }
 0x11d   :  { %694 = vmatprep.subr.bf16.mxu1 %v2533_v11  ;;  %v2612_v11 = vld [vmem:[#allocation5 + $0x350] ss:$8 sps:$4 sm:$0xff]  }
 0x11f   :  { %550 = vmatpush1.bf16.msra.mxu0 %v2528_v12  ;;  %v2615_v12 = vld [vmem:[#allocation5 + $0x3c0] ss:$8 sps:$4 sm:$0xff]  }
 0x120   :  { %695 = vmatpush1.bf16.msra.mxu1 %v2531_v13  ;;  %829 = vmatprep.subr.bf16.mxu0 %v2536_v14  ;;  %v2620_v13 = vld [vmem:[#allocation5 + $0x364] ss:$8 sps:$4 sm:$0xff]   ;;  %v2623_v14 = vld [vmem:[#allocation5 + $0x3d4] ss:$8 sps:$4 sm:$0xff]  }
 0x121   :  { %696 = vmatprep.subr.bf16.mxu1 %v2539_v15  ;;  %v2618_v15 = vld [vmem:[#allocation5 + $0x360] ss:$8 sps:$4 sm:$0xff]  }
 0x122   :  { %2143 = vmatmul.mubr.msk.bf16.vlgmr.msra.gmra.mrb[4].mxu0 %vm2142_vm5, %v2910_v48 }
 0x123   :  { %830 = vmatpush1.bf16.msra.mxu0 %v2534_v17  ;;  %861 = vmatprep.mubr.bf16.mxu0 %v2904_v2  ;;  %v2626_v17 = vld [vmem:[#allocation5 + $0x374] ss:$8 sps:$4 sm:$0xff]  }
 0x124   :  { %697 = vmatpush1.bf16.msra.mxu1 %v2537_v18  ;;  %831 = vmatprep.subr.bf16.mxu0 %v2542_v19  ;;  %v1021_v18 = vpop.permute.xlu1 %1020  ;;  %v2629_v19 = vld [vmem:[#allocation5 + $0x3e4] ss:$8 sps:$4 sm:$0xff]  }
 0x125   :  { %976 = vmatprep.subr.bf16.mxu1 %v2545_v20  ;;  %v2624_v20 = vld [vmem:[#allocation5 + $0x370] ss:$8 sps:$4 sm:$0xff]   ;;  %vm1022_vm12 = vcmp.eq.s32.totalorder %v3090_v44, %v1021_v18 }
 0x126   :  { %vm2218_vm13 = vmpackc.low %vm1022_vm12, %vm1022_vm12 }
 0x127   :  { %2162 = vmatmul.mubr.msk.bf16.vlgmr.msra.gmra.mrb[4].mxu1 %vm2161_vm7, %v2910_v48  ;;  %832 = vmatpush1.bf16.msra.mxu0 %v2540_v21  ;;  %v2627_v21 = vld [vmem:[#allocation5 + $0x3e0] ss:$8 sps:$4 sm:$0xff]  }
 0x128   :  { %977 = vmatpush1.bf16.msra.mxu1 %v2543_v22  ;;  %833 = vmatprep.subr.bf16.mxu0 %v2548_v23  ;;  %v2632_v22 = vld [vmem:[#allocation5 + $0x3f4] ss:$8 sps:$4 sm:$0xff]   ;;  %v1168_v23 = vpop.permute.xlu1 %1167 }
 0x129   :  { %978 = vmatprep.subr.bf16.mxu1 %v2551_v24  ;;  %1008 = vmatprep.mubr.bf16.mxu1 %v2904_v2  ;;  %v2630_v24 = vld [vmem:[#allocation5 + $0x3f0] ss:$8 sps:$4 sm:$0xff]   ;;  %vm1169_vm14 = vcmp.eq.s32.totalorder %v3090_v44, %v1168_v23 }
 0x12a   :  { %vm2237_vm15 = vmpackc.low %vm1169_vm14, %vm1169_vm14  ;;  %v2640_v44 = vld [vmem:[#allocation7 + $0x18] sm:$0xff]  }
 0x12b   :  { %834 = vmatpush1.bf16.msra.mxu0 %v2546_v25  ;;  %v2633_v25 = vld [vmem:[#allocation7 + $0x40] sm:$0xff]  }
 0x12c   :  { %979 = vmatpush1.bf16.msra.mxu1 %v2549_v26  ;;  %835 = vmatprep.subr.bf16.mxu0 %v2554_v27  ;;  %v2634_v26 = vld [vmem:[#allocation7] sm:$0xff]   ;;  %v2635_v27 = vld [vmem:[#allocation7 + $0x48] sm:$0xff]  }
 0x12d   :  { %980 = vmatprep.subr.bf16.mxu1 %v2557_v28  ;;  %v2636_v28 = vld [vmem:[#allocation7 + $0x8] sm:$0xff]  }
 0x12f   :  { %836 = vmatpush1.bf16.msra.mxu0 %v2552_v29  ;;  %v2637_v29 = vld [vmem:[#allocation7 + $0x50] sm:$0xff]  }
 0x130   :  { %981 = vmatpush1.bf16.msra.mxu1 %v2555_v30  ;;  %837 = vmatprep.subr.bf16.mxu0 %v2560_v31  ;;  %v2638_v30 = vld [vmem:[#allocation7 + $0x10] sm:$0xff]   ;;  %v2639_v31 = vld [vmem:[#allocation7 + $0x58] sm:$0xff]  }
 0x131   :  { %982 = vmatprep.subr.bf16.mxu1 %v2563_v32  ;;  %v2641_v32 = vld [vmem:[#allocation7 + $0x60] sm:$0xff]  }
 0x133   :  { %838 = vmatpush1.bf16.msra.mxu0 %v2558_v33  ;;  %v2642_v33 = vld [vmem:[#allocation7 + $0x20] sm:$0xff]  }
 0x134   :  { %983 = vmatpush1.bf16.msra.mxu1 %v2561_v34  ;;  %839 = vmatprep.subr.bf16.mxu0 %v2566_v35  ;;  %v2644_v34 = vld [vmem:[#allocation7 + $0x28] sm:$0xff]   ;;  %v2645_v35 = vld [vmem:[#allocation7 + $0x70] sm:$0xff]  }
 0x135   :  { %984 = vmatprep.subr.bf16.mxu1 %v2569_v36  ;;  %v2646_v36 = vld [vmem:[#allocation7 + $0x30] sm:$0xff]  }
 0x137   :  { %840 = vmatpush1.bf16.msra.mxu0 %v2564_v37  ;;  %v2647_v37 = vld [vmem:[#allocation7 + $0x78] sm:$0xff]  }
 0x138   :  { %985 = vmatpush1.bf16.msra.mxu1 %v2567_v38  ;;  %841 = vmatprep.subr.bf16.mxu0 %v2572_v39  ;;  %v2648_v38 = vld [vmem:[#allocation7 + $0x38] sm:$0xff]   ;;  %v2649_v39 = vld [vmem:[#allocation8] sm:$0xff]  }
 0x139   :  { %986 = vmatprep.subr.bf16.mxu1 %v2575_v40  ;;  %v2911_v40 = vmov 0.0  }
 0x13b   :  { %842 = vmatpush1.bf16.msra.mxu0 %v2570_v41  ;;  %v2650_v41 = vld [vmem:[#allocation8 + $0x8] sm:$0xff]  }
 0x13c   :  { %987 = vmatpush1.bf16.msra.mxu1 %v2573_v42  ;;  %843 = vmatprep.subr.bf16.mxu0 %v2578_v45  ;;  %v2651_v42 = vld [vmem:[#allocation8 + $0x10] sm:$0xff]   ;;  %v2652_v45 = vld [vmem:[#allocation8 + $0x18] sm:$0xff]  }
 0x13d   :  { %988 = vmatprep.subr.bf16.mxu1 %v2581_v47 }
 0x13f   :  { %844 = vmatpush1.bf16.msra.mxu0 %v2576_v49 }
 0x140   :  { %989 = vmatpush1.bf16.msra.mxu1 %v2579_v50  ;;  %1123 = vmatprep.subr.bf16.mxu0 %v2584_v51  ;;  %v2654_v51 = vld [vmem:[#allocation8 + $0x28] sm:$0xff]  }
 0x141   :  { %990 = vmatprep.subr.bf16.mxu1 %v2587_v52 }
 0x142   :  { %2181 = vmatmul.mubr.msk.bf16.vlgmr.msra.gmra.mrb[8].mxu0 %vm2180_vm9, %v2910_v48 }
 0x143   :  { %1124 = vmatpush1.bf16.msra.mxu0 %v2582_v54  ;;  %1155 = vmatprep.mubr.bf16.mxu0 %v2904_v2 }
 0x144   :  { %991 = vmatpush1.bf16.msra.mxu1 %v2585_v55  ;;  %1125 = vmatprep.subr.bf16.mxu0 %v2590_v56 }
 0x145   :  { %1270 = vmatprep.subr.bf16.mxu1 %v2593_v57 }
 0x147   :  { %2200 = vmatmul.mubr.msk.bf16.vlgmr.msra.gmra.mrb[8].mxu1 %vm2199_vm11, %v2910_v48  ;;  %1126 = vmatpush1.bf16.msra.mxu0 %v2588_v58 }
 0x148   :  { %1271 = vmatpush1.bf16.msra.mxu1 %v2591_v59  ;;  %1127 = vmatprep.subr.bf16.mxu0 %v2596_v60 }
 0x149   :  { %1272 = vmatprep.subr.bf16.mxu1 %v2599_v61  ;;  %1302 = vmatprep.mubr.bf16.mxu1 %v2904_v2 }
 0x14b   :  { %1128 = vmatpush1.bf16.msra.mxu0 %v2594_v62 }
 0x14c   :  { %1273 = vmatpush1.bf16.msra.mxu1 %v2597_v63  ;;  %1129 = vmatprep.subr.bf16.mxu0 %v2602_v0 }
 0x14d   :  { %1274 = vmatprep.subr.bf16.mxu1 %v2605_v1 }
 0x14f   :  { %1130 = vmatpush1.bf16.msra.mxu0 %v2600_v3 }
 0x150   :  { %1275 = vmatpush1.bf16.msra.mxu1 %v2603_v4  ;;  %1131 = vmatprep.subr.bf16.mxu0 %v2608_v5 }
 0x151   :  { %1276 = vmatprep.subr.bf16.mxu1 %v2611_v6 }
 0x153   :  { %1132 = vmatpush1.bf16.msra.mxu0 %v2606_v7 }
 0x154   :  { %1277 = vmatpush1.bf16.msra.mxu1 %v2609_v8  ;;  %1133 = vmatprep.subr.bf16.mxu0 %v2614_v9 }
 0x155   :  { %1278 = vmatprep.subr.bf16.mxu1 %v2617_v10 }
 0x157   :  { %1134 = vmatpush1.bf16.msra.mxu0 %v2612_v11 }
 0x158   :  { %1279 = vmatpush1.bf16.msra.mxu1 %v2615_v12  ;;  %1135 = vmatprep.subr.bf16.mxu0 %v2620_v13 }
 0x159   :  { %1280 = vmatprep.subr.bf16.mxu1 %v2623_v14 }
 0x15b   :  { %1136 = vmatpush1.bf16.msra.mxu0 %v2618_v15 }
 0x15c   :  { %1281 = vmatpush1.bf16.msra.mxu1 %v2621_v16  ;;  %1137 = vmatprep.subr.bf16.mxu0 %v2626_v17 }
 0x15d   :  { %1282 = vmatprep.subr.bf16.mxu1 %v2629_v19 }
 0x15f   :  { %1138 = vmatpush1.bf16.msra.mxu0 %v2624_v20  ;;  %v3123_v20 = vshrl.u32 %v140_v43, 7 }
 0x160   :  { %1283 = vmatpush1.bf16.msra.mxu1 %v2627_v21  ;;  %2307 = vmatprep.subr.bf16.mxu0 %v2633_v25  ;;  %v1313_v25 = vld [vmem:[%s3190_s2] sm:$0x3] }
 0x161   :  { %1284 = vmatprep.subr.bf16.mxu1 %v2632_v22  ;;  %v1317_v22 = vsub.s32 0, %v3123_v20 }
 0x162   :  { %2219 = vmatmul.mubr.msk.bf16.vlgmr.msra.gmra.mrb[12].mxu0 %vm2218_vm13, %v2910_v48 }
 0x163   :  { %2308 = vmatpush3.bf16.msra.mxu0 %v2634_v26  ;;  %v1321_v26 = vsub.s32 1, %v3123_v20 }
 0x164   :  { %1285 = vmatpush1.bf16.msra.mxu1 %v2630_v24  ;;  %2309 = vmatprep.subr.bf16.mxu0 %v2635_v27 }
 0x165   :  { %2369 = vmatprep.subr.bf16.mxu1 %v2911_v40  ;;  %v1322_v43 = vrot.slane %v1313_v25, %v1321_v26 }
 0x167   :  { %2238 = vmatmul.mubr.msk.bf16.vlgmr.msra.gmra.mrb[12].mxu1 %vm2237_vm15, %v2910_v48  ;;  %2310 = vmatpush3.bf16.msra.mxu0 %v2636_v28  ;;  %v2643_v48 = vld [vmem:[#allocation7 + $0x68] sm:$0xff]  }
 0x168   :  { %2311 = vmatprep.subr.bf16.mxu0 %v2637_v29  ;;  %2370 = vmatpush3.bf16.msra.mxu1 %v2649_v39 }
 0x169   :  { %2371 = vmatprep.subr.bf16.mxu1 %v2911_v40  ;;  %2385 = vmatprep.mubr.msk.bf16.mxu1 %vm2912_vm0, %v2911_v40 }
 0x16b   :  { %2312 = vmatpush3.bf16.msra.mxu0 %v2638_v30  ;;  %v1318_v30 = vrot.slane %v1313_v25, %v1317_v22  ;;  %v2689_v25 = vld [vmem:[#allocation13 + $0x40] sm:$0xff]  }
 0x16c   :  { %2313 = vmatprep.subr.bf16.mxu0 %v2639_v31  ;;  %2372 = vmatpush3.bf16.msra.mxu1 %v2650_v41 }
 0x16d   :  { %2373 = vmatprep.subr.bf16.mxu1 %v2911_v40 }
 0x16f   :  { %2314 = vmatpush3.bf16.msra.mxu0 %v2640_v44 }
 0x170   :  { %2315 = vmatprep.subr.bf16.mxu0 %v2641_v32  ;;  %2374 = vmatpush3.bf16.msra.mxu1 %v2651_v42  ;;  %v2655_v42 = vld [vmem:[#allocation8 + $0x30] sm:$0xff]  }
 0x171   :  { %2375 = vmatprep.subr.bf16.mxu1 %v2911_v40 }
 0x173   :  { %2316 = vmatpush3.bf16.msra.mxu0 %v2642_v33 }
 0x174   :  { %2317 = vmatprep.subr.bf16.mxu0 %v2643_v48  ;;  %2376 = vmatpush3.bf16.msra.mxu1 %v2652_v45  ;;  %v2656_v45 = vld [vmem:[#allocation8 + $0x38] sm:$0xff]  }
 0x175   :  { %2377 = vmatprep.subr.bf16.mxu1 %v2911_v40 }
 0x177   :  { %2318 = vmatpush3.bf16.msra.mxu0 %v2644_v34 }
 0x178   :  { %2319 = vmatprep.subr.bf16.mxu0 %v2645_v35  ;;  %2378 = vmatpush3.bf16.msra.mxu1 %v2653_v46  ;;  %v2657_v46 = vld [vmem:[#allocation10] sm:$0xff]  }
 0x179   :  { %2379 = vmatprep.subr.bf16.mxu1 %v2911_v40 }
 0x17b   :  { %2320 = vmatpush3.bf16.msra.mxu0 %v2646_v36 }
 0x17c   :  { %2321 = vmatprep.subr.bf16.mxu0 %v2647_v37  ;;  %2380 = vmatpush3.bf16.msra.mxu1 %v2654_v51  ;;  %v2661_v51 = vld [vmem:[#allocation10 + $0x20] sm:$0xff]  }
 0x17d   :  { %2381 = vmatprep.subr.bf16.mxu1 %v2911_v40 }
 0x17f   :  { %2322 = vmatpush3.bf16.msra.mxu0 %v2648_v38 }
 0x180   :  { %2389 = vmatprep.subr.bf16.mxu0 %v2911_v40  ;;  %2382 = vmatpush3.bf16.msra.mxu1 %v2655_v42 }
 0x181   :  { %2383 = vmatprep.subr.bf16.mxu1 %v2911_v40 }
 0x184   :  { %2384 = vmatpush3.bf16.msra.mxu1 %v2656_v45 }
 0x1d5   :  { %v303_v47 = vpop.f32.mrb[0].mxu0 }
 0x1d6   :  { %v305_v49 = vpop.f32.mrb[1].mxu0 }
 0x1d7   :  { %v307_v50 = vpop.f32.mrb[2].mxu0 }
 0x1d8   :  { %v308_v52 = vpop.f32.mrb[3].mxu0  ;;  %v2660_v50 = vld [vmem:[#allocation10 + $0x18] sm:$0xff]  }
 0x1d9   :  { %v2662_v52 = vld [vmem:[#allocation10 + $0x28] sm:$0xff]  }
 0x1da   :  { %v424_v53 = vpop.f32.mrb[0].mxu1 }
 0x1db   :  { %v425_v54 = vadd.f32 %v424_v53, %v303_v47  ;;  %v426_v55 = vpop.f32.mrb[1].mxu1  ;;  %v2658_v47 = vld [vmem:[#allocation10 + $0x8] sm:$0xff]  }
 0x1dc   :  { %v427_v56 = vadd.f32 %v426_v55, %v305_v49  ;;  %v428_v57 = vpop.f32.mrb[2].mxu1  ;;  %v2659_v49 = vld [vmem:[#allocation10 + $0x10] sm:$0xff]  }
 0x1dd   :  { %v429_v58 = vpop.f32.mrb[3].mxu1 }
 0x1f5   :  { %v569_v59 = vpop.f32.mrb[4].mxu0 }
 0x1f6   :  { %v576_v60 = vadd.f32 %v569_v59, %v425_v54  ;;  %v571_v61 = vpop.f32.mrb[5].mxu0  ;;  %v2239_v54 = vld [vmem:[%s3192_s4] ss:$0 sm:$0xff] }
 0x1f7   :  { %v577_v62 = vadd.f32 %v571_v61, %v427_v56  ;;  %v573_v63 = vpop.f32.mrb[6].mxu0 }
 0x1f8   :  { %v574_v0 = vpop.f32.mrb[7].mxu0  ;;  %v2664_v63 = vld [vmem:[#allocation10 + $0x38] sm:$0xff]  }
 0x1f9   :  { %v2665_v0 = vld [vmem:[#allocation11] ss:$8 sps:$4 sm:$0xff]  }
 0x1fa   :  { %v716_v1 = vpop.f32.mrb[4].mxu1 }
 0x1fb   :  { %v723_v3 = vadd.f32 %v716_v1, %v576_v60  ;;  %v718_v4 = vpop.f32.mrb[5].mxu1  ;;  %v2667_v1 = vld [vmem:[#allocation11 + $0x4] ss:$8 sps:$4 sm:$0xff]  }
 0x1fc   :  { %v724_v5 = vadd.f32 %v718_v4, %v577_v62  ;;  %v720_v6 = vpop.f32.mrb[6].mxu1  ;;  %v2663_v62 = vld [vmem:[#allocation10 + $0x30] sm:$0xff]   ;;  %1844 = vmatprep.subr.bf16.mxu1 %v2667_v1 }
 0x1fd   :  { %v721_v7 = vpop.f32.mrb[7].mxu1  ;;  %v2668_v4 = vld [vmem:[#allocation11 + $0x10] ss:$8 sps:$4 sm:$0xff]   ;;  %v2671_v6 = vld [vmem:[#allocation11 + $0x20] ss:$8 sps:$4 sm:$0xff]  }
 0x1fe   :  { %v2676_v7 = vld [vmem:[#allocation11 + $0x34] ss:$8 sps:$4 sm:$0xff]  }
 0x215   :  { %v863_v8 = vpop.f32.mrb[8].mxu0 }
 0x216   :  { %v870_v9 = vadd.f32 %v863_v8, %v723_v3  ;;  %v865_v10 = vpop.f32.mrb[9].mxu0  ;;  %v2670_v3 = vld [vmem:[#allocation11 + $0x14] ss:$8 sps:$4 sm:$0xff]   ;;  %v2679_v8 = vld [vmem:[#allocation11 + $0x44] ss:$8 sps:$4 sm:$0xff]  }
 0x217   :  { %v871_v11 = vadd.f32 %v865_v10, %v724_v5  ;;  %v867_v12 = vpop.f32.mrb[10].mxu0  ;;  %v2673_v5 = vld [vmem:[#allocation11 + $0x24] ss:$8 sps:$4 sm:$0xff]   ;;  %v2680_v10 = vld [vmem:[#allocation11 + $0x50] ss:$8 sps:$4 sm:$0xff]  }
 0x218   :  { %v868_v13 = vpop.f32.mrb[11].mxu0 }
 0x21a   :  { %v1010_v14 = vpop.f32.mrb[8].mxu1 }
 0x21b   :  { %v1017_v15 = vadd.f32 %v1010_v14, %v870_v9  ;;  %v1012_v16 = vpop.f32.mrb[9].mxu1  ;;  %v2682_v9 = vld [vmem:[#allocation11 + $0x54] ss:$8 sps:$4 sm:$0xff]  }
 0x21c   :  { %v1018_v17 = vadd.f32 %v1012_v16, %v871_v11  ;;  %v1014_v18 = vpop.f32.mrb[10].mxu1  ;;  %v2256_v11 = vld [vmem:[%s3194_s6] ss:$0 sm:$0xff] }
 0x21d   :  { %v1015_v19 = vpop.f32.mrb[11].mxu1 }
 0x21e   :  { %v2685_v19 = vld [vmem:[#allocation11 + $0x64] ss:$8 sps:$4 sm:$0xff]  }
 0x235   :  { %v1157_v21 = vpop.f32.mrb[12].mxu0 }
 0x236   :  { %v1164_v23 = vadd.f32 %v1157_v21, %v1017_v15  ;;  %v1159_v24 = vpop.f32.mrb[13].mxu0  ;;  %v2683_v21 = vld [vmem:[#allocation11 + $0x60] ss:$8 sps:$4 sm:$0xff]  }
 0x237   :  { %v1165_v27 = vadd.f32 %v1159_v24, %v1018_v17  ;;  %v1161_v28 = vpop.f32.mrb[14].mxu0  ;;  %v2686_v24 = vld [vmem:[#allocation11 + $0x70] ss:$8 sps:$4 sm:$0xff]  }
 0x238   :  { %v1162_v29 = vpop.f32.mrb[15].mxu0  ;;  %v2691_v28 = vld [vmem:[#allocation13 + $0x48] sm:$0xff]  }
 0x239   :  { %v2692_v29 = vld [vmem:[#allocation13 + $0x8] sm:$0xff]  }
 0x23a   :  { %v1304_v31 = vpop.f32.mrb[12].mxu1 }
 0x23b   :  { %v1311_v44 = vadd.f32 %v1304_v31, %v1164_v23  ;;  %v1306_v32 = vpop.f32.mrb[13].mxu1  ;;  %v2688_v23 = vld [vmem:[#allocation11 + $0x74] ss:$8 sps:$4 sm:$0xff]  }
 0x23c   :  { %v1312_v33 = vadd.f32 %v1306_v32, %v1165_v27  ;;  %v1308_v48 = vpop.f32.mrb[14].mxu1  ;;  %v2690_v27 = vld [vmem:[#allocation13] sm:$0xff]   ;;  %v2694_v31 = vld [vmem:[#allocation13 + $0x10] sm:$0xff]  }
 0x23d   :  { %v1325_v34 = vadd.f32 %v1318_v30, %v1311_v44  ;;  %v1309_v35 = vpop.f32.mrb[15].mxu1  ;;  %v2693_v30 = vld [vmem:[#allocation13 + $0x50] sm:$0xff]   ;;  %v2696_v44 = vld [vmem:[#allocation13 + $0x18] sm:$0xff]   ;;  %v2697_v32 = vld [vmem:[#allocation13 + $0x60] sm:$0xff]  }
 0x23e   :  { %v1326_v36 = vadd.f32 %v1322_v43, %v1312_v33  ;;  %v2695_v43 = vld [vmem:[#allocation13 + $0x58] sm:$0xff]   ;;  %v2698_v33 = vld [vmem:[#allocation13 + $0x20] sm:$0xff]   ;;  %v2699_v48 = vld [vmem:[#allocation13 + $0x68] sm:$0xff]  }
 0x23f   :  { %v1327_v37 = vmax.f32 %v1325_v34, 0.0  ;;  %v2265_v34 = vld [vmem:[%s3196_s8] ss:$0 sm:$0xff] }
 0x240   :  { %v1328_v38 = vmax.f32 %v1326_v36, 0.0 }
 0x241   :  { %v3136_v41 = vpack.c.bf16 %v1327_v37, %v1327_v37 }
 0x242   :  { %v3134_v39 = vpack.c.bf16 %v1328_v38, %v1328_v38 }
 0x244   :  { %1498 = vmatprep.mubr.bf16.mxu0 %v3134_v39 }
 0x245   :  { %1499 = vmatmul.mubr.bf16.vlgmr.msra.gmra.mrb[16].mxu0 %v3136_v41 }
 0x246   :  { %2405 = vmatprep.mubr.msk.bf16.mxu0 %vm2912_vm0, %v2911_v40  ;;  %2390 = vmatpush3.bf16.msra.mxu0 %v2657_v46 }
 0x247   :  { %2391 = vmatprep.subr.bf16.mxu0 %v2911_v40 }
 0x24a   :  { %2392 = vmatpush3.bf16.msra.mxu0 %v2658_v47 }
 0x24b   :  { %2393 = vmatprep.subr.bf16.mxu0 %v2911_v40 }
 0x24e   :  { %2394 = vmatpush3.bf16.msra.mxu0 %v2659_v49 }
 0x24f   :  { %2395 = vmatprep.subr.bf16.mxu0 %v2911_v40 }
 0x252   :  { %2396 = vmatpush3.bf16.msra.mxu0 %v2660_v50  ;;  %v2700_v50 = vld [vmem:[#allocation13 + $0x28] sm:$0xff]  }
 0x253   :  { %2397 = vmatprep.subr.bf16.mxu0 %v2911_v40 }
 0x256   :  { %2398 = vmatpush3.bf16.msra.mxu0 %v2661_v51  ;;  %v2701_v51 = vld [vmem:[#allocation13 + $0x70] sm:$0xff]  }
 0x257   :  { %2399 = vmatprep.subr.bf16.mxu0 %v2911_v40 }
 0x25a   :  { %2400 = vmatpush3.bf16.msra.mxu0 %v2662_v52  ;;  %v2702_v52 = vld [vmem:[#allocation13 + $0x30] sm:$0xff]  }
 0x25b   :  { %2401 = vmatprep.subr.bf16.mxu0 %v2911_v40 }
 0x25e   :  { %2402 = vmatpush3.bf16.msra.mxu0 %v2663_v62 }
 0x25f   :  { %2403 = vmatprep.subr.bf16.mxu0 %v2911_v40  ;;  %v2677_v40 = vld [vmem:[#allocation11 + $0x40] ss:$8 sps:$4 sm:$0xff]  }
 0x262   :  { %2404 = vmatpush3.bf16.msra.mxu0 %v2664_v63  ;;  %v1886_v63 = vunpack.c.l.bf16 %v3134_v39 }
 0x263   :  { %2347 = vmatprep.subr.bf16.mxu0 %v2689_v25 }
 0x318   :  { %v2323_v53 = vpop.f32.mrb[16].mxu0 }
 0x319   :  { %v2324_v55 = vpop.f32.mrb[17].mxu0 }
 0x31a   :  { %v2325_v56 = vadd.f32 %v2324_v55, %v2323_v53  ;;  %v2326_v57 = vpop.f32.mrb[18].mxu0  ;;  %v2703_v53 = vld [vmem:[#allocation13 + $0x78] sm:$0xff]  }
 0x31b   :  { %v2327_v58 = vpop.f32.mrb[19].mxu0  ;;  %v1752_v55 = vld [vmem:[%s3198_s10] sm:$0x3] }
 0x31c   :  { %v1501_v59 = vadd.f32 %v2325_v56, %v2239_v54  ;;  %v2704_v54 = vld [vmem:[#allocation13 + $0x38] sm:$0xff]   ;;  %v1757_v56 = vrot.slane %v1752_v55, %v1317_v22  ;;  %v1761_v57 = vrot.slane %v1752_v55, %v1321_v26 }
 0x31d   :  { %v2290_v22 = vld [vmem:[%s3200_s12] ss:$0 sm:$0xff] }
 0x31e   :  { %v1506_v60 = vmax.f32 %v1501_v59, 0.0 }
 0x320   :  { %v3152_v61 = vpack.c.bf16 %v1506_v60, %v1506_v60  ;;  %v1885_v60 = vunpack.c.l.bf16 %v3136_v41 }
 0x322   :  { %2386 = vmatmul.mubr.bf16.vlgmr.msra.gmra.mrb[16].mxu1 %v3152_v61  ;;  %v1732_v37 = vunpack.c.l.bf16 %v3152_v61 }
 0x323   :  { %1876 = vmatprep.mubr.bf16.mxu1 %v2904_v2  ;;  %1845 = vmatpush1.bf16.msra.mxu1 %v2665_v0  ;;  %v2674_v2 = vld [vmem:[#allocation11 + $0x30] ss:$8 sps:$4 sm:$0xff]  }
 0x324   :  { %1846 = vmatprep.subr.bf16.mxu1 %v2670_v3 }
 0x327   :  { %1847 = vmatpush1.bf16.msra.mxu1 %v2668_v4 }
 0x328   :  { %1848 = vmatprep.subr.bf16.mxu1 %v2673_v5 }
 0x32b   :  { %1849 = vmatpush1.bf16.msra.mxu1 %v2671_v6 }
 0x32c   :  { %1850 = vmatprep.subr.bf16.mxu1 %v2676_v7 }
 0x32f   :  { %1851 = vmatpush1.bf16.msra.mxu1 %v2674_v2 }
 0x330   :  { %1852 = vmatprep.subr.bf16.mxu1 %v2679_v8 }
 0x333   :  { %1853 = vmatpush1.bf16.msra.mxu1 %v2677_v40 }
 0x334   :  { %1854 = vmatprep.subr.bf16.mxu1 %v2682_v9 }
 0x337   :  { %1855 = vmatpush1.bf16.msra.mxu1 %v2680_v10 }
 0x338   :  { %1856 = vmatprep.subr.bf16.mxu1 %v2685_v19 }
 0x33b   :  { %1857 = vmatpush1.bf16.msra.mxu1 %v2683_v21 }
 0x33c   :  { %1858 = vmatprep.subr.bf16.mxu1 %v2688_v23 }
 0x33f   :  { %1859 = vmatpush1.bf16.msra.mxu1 %v2686_v24 }
 0x3f5   :  { %v1613_v12 = vpop.f32.mrb[16].mxu1 }
 0x3f6   :  { %v1614_v13 = vadd.f32 %v2256_v11, %v1613_v12  ;;  %v2387_v14 = vpop.f32.mrb[17].mxu1 }
 0x3f7   :  { %v1616_v15 = vpop.f32.mrb[18].mxu1 }
 0x3f8   :  { %v1619_v16 = vmax.f32 %v1614_v13, 0.0  ;;  %v2388_v17 = vpop.f32.mrb[19].mxu1 }
 0x3fa   :  { %v1620_v18 = vpack.c.bf16 %v1619_v16, %v1619_v16 }
 0x3fc   :  { %2406 = vmatmul.mubr.bf16.vlgmr.msra.gmra.mrb[20].mxu0 %v1620_v18 }
 0x3fd   :  { %2348 = vmatpush3.bf16.msra.mxu0 %v2690_v27 }
 0x3fe   :  { %2349 = vmatprep.subr.bf16.mxu0 %v2691_v28 }
 0x401   :  { %2350 = vmatpush3.bf16.msra.mxu0 %v2692_v29 }
 0x402   :  { %2351 = vmatprep.subr.bf16.mxu0 %v2693_v30 }
 0x405   :  { %2352 = vmatpush3.bf16.msra.mxu0 %v2694_v31 }
 0x406   :  { %2353 = vmatprep.subr.bf16.mxu0 %v2695_v43 }
 0x409   :  { %2354 = vmatpush3.bf16.msra.mxu0 %v2696_v44 }
 0x40a   :  { %2355 = vmatprep.subr.bf16.mxu0 %v2697_v32 }
 0x40d   :  { %2356 = vmatpush3.bf16.msra.mxu0 %v2698_v33 }
 0x40e   :  { %2357 = vmatprep.subr.bf16.mxu0 %v2699_v48 }
 0x411   :  { %2358 = vmatpush3.bf16.msra.mxu0 %v2700_v50 }
 0x412   :  { %2359 = vmatprep.subr.bf16.mxu0 %v2701_v51 }
 0x415   :  { %2360 = vmatpush3.bf16.msra.mxu0 %v2702_v52 }
 0x416   :  { %2361 = vmatprep.subr.bf16.mxu0 %v2703_v53 }
 0x419   :  { %2362 = vmatpush3.bf16.msra.mxu0 %v2704_v54 }
 0x4cf   :  { %v1726_v35 = vpop.f32.mrb[20].mxu0 }
 0x4d0   :  { %v1727_v36 = vadd.f32 %v2265_v34, %v1726_v35  ;;  %v2407_v38 = vpop.f32.mrb[21].mxu0 }
 0x4d1   :  { %v1729_v42 = vpop.f32.mrb[22].mxu0 }
 0x4d2   :  { %v1733_v45 = vadd.f32 %v1732_v37, %v1727_v36  ;;  %v2408_v46 = vpop.f32.mrb[23].mxu0 }
 0x4d4   :  { %v1734_v47 = vmax.f32 %v1733_v45, 0.0 }
 0x4d6   :  { %v1735_v49 = vpack.c.bf16 %v1734_v47, %v1734_v47 }
 0x4d8   :  { %1877 = vmatmul.mubr.bf16.vlgmr.msra.gmra.mrb[20].mxu1 %v1735_v49 }
 0x5ab   :  { %v1878_v58 = vpop.f32.mrb[20].mxu1 }
 0x5ac   :  { %v1879_v59 = vadd.f32 %v1878_v58, %v1757_v56  ;;  %v1880_v61 = vpop.f32.mrb[21].mxu1 }
 0x5ad   :  { %v1881_v62 = vadd.f32 %v1880_v61, %v1761_v57  ;;  %v1882_v0 = vpop.f32.mrb[22].mxu1 }
 0x5ae   :  { %v1887_v1 = vadd.f32 %v1885_v60, %v1879_v59  ;;  %v1883_v3 = vpop.f32.mrb[23].mxu1 }
 0x5af   :  { %v1888_v4 = vadd.f32 %v1886_v63, %v1881_v62 }
 0x5b0   :  { %v1889_v5 = vmax.f32 %v1887_v1, 0.0 }
 0x5b1   :  { %v1890_v6 = vmax.f32 %v1888_v4, 0.0 }
 0x5b2   :  { %v1891_v2 = vpack.c.bf16 %v1889_v5, %v1889_v5 }
 0x5b3   :  { %v1892_v7 = vpack.c.bf16 %v1890_v6, %v1890_v6 }
 0x5b5   :  { %2060 = vmatprep.mubr.bf16.mxu0 %v1892_v7 }
 0x5b6   :  { %2061 = vmatmul.mubr.bf16.vlgmr.msra.gmra.mrb[24].mxu0 %v1891_v2 }
 0x689   :  { %v2363_v20 = vpop.f32.mrb[24].mxu0 }
 0x68a   :  { %v2364_v26 = vpop.f32.mrb[25].mxu0 }
 0x68b   :  { %v2365_v41 = vadd.f32 %v2364_v26, %v2363_v20  ;;  %v2366_v39 = vpop.f32.mrb[26].mxu0 }
 0x68c   :  { %v2367_v8 = vpop.f32.mrb[27].mxu0 }
 0x68d   :  { %v2063_v40 = vadd.f32 %v2365_v41, %v2290_v22 }
 0x68f   :  { %2068 = vst [vmem:[#allocation14] sm:$0xff] %v2063_v40 }
 0x690   :  { %2870 = shalt.err (!%p2867_p4)
}
 0x691   :  { %s2871_s12 = scalar_lea.hbm %s3201_s13, 128 }
 0x692   :  { %p2872_p5 = scmp.ne.s32.totalorder %s3201_s13, %s2871_s12  ;;  %p2875_p6 = scmp.lt.u32.totalorder %s2871_s12, %s3201_s13 }
 0x694   :  { %p2877_p7 = pnand %p2875_p6, %p2872_p5 }
 0x696   :  { %2880 = shalt.err (!%p2877_p7)
}
 0x697   :  { %2078 = dma.vmem_to_hbm [thread:$0]  %s2076_s25, 128, %s3201_s13, [#allocation4]  }
 0x698   :  { %2889 = dma.done.wait [#allocation4], 128  }
 0x699   :  { %2890 = vsyncadd [#allocation4], 4294967168 }
 0x69a   :  { %2082 = vsyncpa [#allocation3], 1 }
 0x69b   :  { %2083 = vsyncpa [#allocation6], 1 }
 0x69c   :  { %2084 = vsyncpa [#allocation9], 1 }
 0x69d   :  { %2085 = vsyncpa [#allocation12], 1 }
 0x69e   :  { %2086 = vsyncpa [#allocation4], 1 }

</bundles_post_ra>
